<compile_context>
chip_gen: v7x
topology: tpu7x:2x2x1
jax: 0.10.0
libtpu: 0.0.40
codegen_flags: <defaults>
</compile_context>

<pallas_src>
import math
import numpy as np
import jax
import jax.numpy as jnp
from jax.experimental import pallas as pl
from jax.experimental.pallas import tpu as pltpu

_VMEM_LIMIT = 32 * 1024 * 1024


def _pick_batch_block(batch, per_batch_bytes, target_bytes=1 << 19):
    """Pick a batch-block size: divisor of `batch`, ~target bytes per grid step,
    and at least 2 grid steps when batch >= 2 (pipeline / megacore overlap)."""
    bb = max(1, min(batch, target_bytes // max(per_batch_bytes, 1)))
    if batch >= 2:
        bb = min(bb, max(1, batch // 2))
    bb = max(1, bb)
    while batch % bb:
        bb -= 1
    return bb


# ---------------------------------------------------------------------------
# Pallas kernel 1: complex spectral multiply (3-multiply form, planar re/im)
#   out[b, o, m] = sum_i x[b, i, m] * w[i, o, m]
# ---------------------------------------------------------------------------
def _spectral_mul_kernel(xr_ref, xi_ref, wr_ref, wd_ref, ws_ref, or_ref, oi_ref):
    xr = xr_ref[...]                            # (Bb, Cin, Mp)
    xi = xi_ref[...]
    xs = xr + xi                                # hoisted out of the Cin loop
    bb, cin, mp = xr.shape
    cout = wr_ref.shape[1]
    acc_r = jnp.zeros((bb, cout, mp), jnp.float32)
    acc_i = jnp.zeros((bb, cout, mp), jnp.float32)
    # Cin is small & static -> unrolled VPU loop.
    # TODO(synk): for large Cin/Cout*Mp accumulate in VMEM scratch + fori_loop(unroll=True).
    for i in range(cin):
        wr_i = wr_ref[i][None]                  # (1, Cout, Mp)
        wd_i = wd_ref[i][None]                  # wi - wr
        ws_i = ws_ref[i][None]                  # wr + wi
        k1 = xs[:, i:i + 1, :] * wr_i           # wr * (xr + xi)  -> (Bb, Cout, Mp)
        acc_r = acc_r + (k1 - xi[:, i:i + 1, :] * ws_i)
        acc_i = acc_i + (k1 + xr[:, i:i + 1, :] * wd_i)
    or_ref[...] = acc_r
    oi_ref[...] = acc_i


def spectral_mul(x_ft, weights):
    """einsum('bixy,ioxy->boxy') on complex inputs; returns planar (re, im) float32."""
    B, Cin, KY, KX = x_ft.shape
    Cout = weights.shape[1]
    M = KY * KX
    Mp = ((M + 127) // 128) * 128               # lane-dense mode axis
    pad = Mp - M

    def padm(a):
        return jnp.pad(a, ((0, 0), (0, 0), (0, pad)))

    xr = padm(jnp.real(x_ft).reshape(B, Cin, M).astype(jnp.float32))
    xi = padm(jnp.imag(x_ft).reshape(B, Cin, M).astype(jnp.float32))
    wr = jnp.real(weights).reshape(Cin, Cout, M).astype(jnp.float32)
    wi = jnp.imag(weights).reshape(Cin, Cout, M).astype(jnp.float32)
    wr_p = padm(wr)
    wd_p = padm(wi - wr)                        # precomputed once in XLA
    ws_p = padm(wr + wi)

    per_batch = (Cin + Cout) * Mp * 4 * 2
    Bb = _pick_batch_block(B, per_batch)
    steps = B // Bb

    out_r, out_i = pl.pallas_call(
        _spectral_mul_kernel,
        out_shape=(jax.ShapeDtypeStruct((B, Cout, Mp), jnp.float32),
                   jax.ShapeDtypeStruct((B, Cout, Mp), jnp.float32)),
        grid=(steps,),
        in_specs=[pl.BlockSpec((Bb, Cin, Mp), lambda b: (b, 0, 0)),
                  pl.BlockSpec((Bb, Cin, Mp), lambda b: (b, 0, 0)),
                  # TODO(synk): pipeline_mode=pl.Buffered(1) on these invariant slabs
                  # for v7x VMEM headroom at production sizes.
                  pl.BlockSpec((Cin, Cout, Mp), lambda b: (0, 0, 0)),
                  pl.BlockSpec((Cin, Cout, Mp), lambda b: (0, 0, 0)),
                  pl.BlockSpec((Cin, Cout, Mp), lambda b: (0, 0, 0))],
        out_specs=(pl.BlockSpec((Bb, Cout, Mp), lambda b: (b, 0, 0)),
                   pl.BlockSpec((Bb, Cout, Mp), lambda b: (b, 0, 0))),
        compiler_params=pltpu.CompilerParams(
            dimension_semantics=("parallel",),
            vmem_limit_bytes=_VMEM_LIMIT),
    )(xr, xi, wr_p, wd_p, ws_p)
    out_r = out_r[:, :, :M].reshape(B, Cout, KY, KX)
    out_i = out_i[:, :, :M].reshape(B, Cout, KY, KX)
    return out_r, out_i


# ---------------------------------------------------------------------------
# Pallas kernel 2: BatchNorm2d batch statistics (pass 1 of two-pass BN)
#   input layout (C, B*N); accumulates per-channel [sum, sumsq] over column blocks
# ---------------------------------------------------------------------------
def _bn_stats_kernel(y_ref, stat_ref):
    @pl.when(pl.program_id(0) == 0)
    def _init():
        stat_ref[...] = jnp.zeros_like(stat_ref)

    y = y_ref[...]                                              # (C, Nb)
    stat_ref[:, 0:1] += jnp.sum(y, axis=1, keepdims=True)
    stat_ref[:, 1:2] += jnp.sum(y * y, axis=1, keepdims=True)


# ---------------------------------------------------------------------------
# Pallas kernel 3: BN (folded scale/shift) + GELU (tanh, EUP) + 3x3 conv
#   conv = roll+mask im2col slab (9*C, Nb) -> single MXU matmul (Cout, 9*C)@(9*C, Nb)
# ---------------------------------------------------------------------------
_GELU_C = 0.7978845608028654                    # sqrt(2/pi)


def _gelu_tanh(x):
    # tanh-approx GELU (max |err| ~3e-4 vs exact erf GELU); tanh runs on the EUP slot.
    return 0.5 * x * (1.0 + jnp.tanh(_GELU_C * (x + 0.044715 * x * x * x)))


def _make_bn_gelu_conv_kernel(S):
    taps = [(dy, dx) for dy in (-1, 0, 1) for dx in (-1, 0, 1)]

    def kernel(y_ref, s_ref, t_ref, wk_ref, mask_ref, b_ref, o_ref):
        # BatchNorm folded into per-channel scale/shift (computed outside), then GELU.
        a = _gelu_tanh(y_ref[...] * s_ref[...] + t_ref[...])   # (C, Nb)
        nb = a.shape[1]
        cols = []
        for t_i, (dy, dx) in enumerate(taps):
            k = dy * S + dx
            if k == 0:
                cols.append(a)
            else:
                # out[n] = a[(n + k) mod Nb]; every element that wraps across an
                # image (or batch/block) boundary is zeroed by the periodic tap mask.
                sh = pltpu.roll(a, shift=(-k) % nb, axis=1)
                cols.append(sh * mask_ref[t_i:t_i + 1, :])
        slab = jnp.concatenate(cols, axis=0)                    # (9*C, Nb) im2col
        # TODO(synk): cast slab/wk to bf16 on v6e/v7x (kept f32 here for tolerance margin).
        o_ref[...] = jnp.dot(wk_ref[...], slab,
                             preferred_element_type=jnp.float32) + b_ref[...]

    return kernel


def _conv_tap_masks(S):
    idx = np.arange(S * S)
    h, w = idx // S, idx % S
    masks = []
    for dy in (-1, 0, 1):
        for dx in (-1, 0, 1):
            valid = (h + dy >= 0) & (h + dy < S) & (w + dx >= 0) & (w + dx < S)
            masks.append(valid.astype(np.float32))
    return jnp.asarray(np.stack(masks))         # (9, S*S)


def bn_gelu_conv(y, gamma, beta, conv_w, conv_b):
    """Training-mode BatchNorm2d (eps=1e-5) -> GELU -> Conv2d(3x3, padding=1)."""
    B, C, S, S2 = y.shape
    assert S == S2
    N = S * S
    cout = conv_w.shape[0]

    # Channels-major, flattened lane-dense pixel axis: (C, B*N).  Column blocks of
    # width Bb*N contain whole images, so the roll+mask scheme never mixes images.
    yt = jnp.transpose(y.reshape(B, C, N), (1, 0, 2)).reshape(C, B * N)
    Bb = _pick_batch_block(B, C * N * 4)
    Nb = Bb * N
    steps = B // Bb

    # ---- pass 1: global per-channel batch statistics (Pallas accumulator) ----
    stats = pl.pallas_call(
        _bn_stats_kernel,
        out_shape=jax.ShapeDtypeStruct((C, 2), jnp.float32),
        grid=(steps,),
        in_specs=[pl.BlockSpec((C, Nb), lambda i: (0, i))],
        out_specs=pl.BlockSpec((C, 2), lambda i: (0, 0)),
        compiler_params=pltpu.CompilerParams(
            dimension_semantics=("arbitrary",),
            vmem_limit_bytes=_VMEM_LIMIT),
    )(yt)
    count = float(B * N)
    mean = stats[:, 0:1] / count
    # TODO(synk): E[x^2]-mean^2 cancels for large |mean|; use Welford for production data.
    var = jnp.maximum(stats[:, 1:2] / count - mean * mean, 0.0)   # biased var (training BN)
    inv_std = jax.lax.rsqrt(var + 1e-5)
    s = gamma.reshape(C, 1) * inv_std                             # BN folded: a = y*s + t
    t = beta.reshape(C, 1) - mean * s

    # ---- pass 2: normalize + GELU + 3x3 conv (roll+mask im2col, one matmul) ----
    # wk2[o, t*C + c] = conv_w[o, c, ky, kx], tap index t = ky*3 + kx.
    wk2 = jnp.transpose(conv_w, (0, 2, 3, 1)).reshape(cout, 9 * C)
    masks_b = jnp.tile(_conv_tap_masks(S), (1, Bb))               # (9, Nb), period N
    out_t = pl.pallas_call(
        _make_bn_gelu_conv_kernel(S),
        out_shape=jax.ShapeDtypeStruct((cout, B * N), jnp.float32),
        grid=(steps,),
        in_specs=[pl.BlockSpec((C, Nb), lambda i: (0, i)),
                  pl.BlockSpec((C, 1), lambda i: (0, 0)),
                  pl.BlockSpec((C, 1), lambda i: (0, 0)),
                  pl.BlockSpec((cout, 9 * C), lambda i: (0, 0)),
                  pl.BlockSpec((9, Nb), lambda i: (0, 0)),
                  pl.BlockSpec((cout, 1), lambda i: (0, 0))],
        out_specs=pl.BlockSpec((cout, Nb), lambda i: (0, i)),
        compiler_params=pltpu.CompilerParams(
            dimension_semantics=("parallel",),
            vmem_limit_bytes=_VMEM_LIMIT),
    )(yt, s, t, wk2, masks_b, conv_b.reshape(cout, 1))
    return jnp.transpose(out_t.reshape(cout, B, N), (1, 0, 2)).reshape(B, cout, S, S)


# ---------------------------------------------------------------------------
# LiftBlock forward (glue: FFTs, weight assembly, reshapes stay in XLA)
# ---------------------------------------------------------------------------
def _zero_freq_index(n):
    return int(np.argwhere(np.fft.fftshift(np.fft.fftfreq(n)) == 0.0)[0, 0])


def build_spectral_weights(w_y0, w_00, w_yposx, in_ch, out_ch, modes1, modes2):
    # Mirrors Spectral_weights.get_weight()
    wy = jnp.concatenate(
        [w_y0, w_00.astype(jnp.complex64), jnp.conj(jnp.flip(w_y0, axis=-2))],
        axis=-2)                                            # (in, out, 2*m1-1, 1)
    w = jnp.concatenate([wy, w_yposx], axis=-1)             # (in, out, 2*m1-1, m2)
    return w.reshape(in_ch, out_ch, 2 * modes1 - 1, modes2)


def lift_block_forward(x, params, *, modes1, modes2, out_size):
    B, _, H, W = x.shape
    in_size = W
    weights = params["spectral_weights"]                    # (Cin, latent, KY, KX) c64
    latent = weights.shape[1]

    # --- SpectralConv2d ---
    # TODO(synk): rfft2/irfft2/fftshift have no Pallas equivalent; they stay in XLA.
    freq0_in = _zero_freq_index(H)
    x_ft = jnp.fft.fftshift(jnp.fft.rfft2(x, norm="ortho"), axes=-2)
    x_ft = x_ft[..., freq0_in - modes1 + 1:freq0_in + modes1, :modes2]
    out_r, out_i = spectral_mul(x_ft, weights)              # Pallas kernel 1 (planar)

    freq0_out = _zero_freq_index(out_size)
    out_ft = jnp.zeros((B, latent, out_size, out_size // 2 + 1), jnp.complex64)
    out_ft = out_ft.at[..., freq0_out - modes1 + 1:freq0_out + modes1,
                       :modes2].set(jax.lax.complex(out_r, out_i))
    y = jnp.fft.irfft2(jnp.fft.ifftshift(out_ft, axes=-2),
                       s=(out_size, out_size), norm="ortho") * (out_size / in_size)
    y = y.astype(jnp.float32)

    # --- BatchNorm2d (training mode) + GELU + Conv2d(3x3, padding=1) ---
    return bn_gelu_conv(y, params["bn_gamma"], params["bn_beta"],
                        params["conv_w"], params["conv_b"])


# ---------------------------------------------------------------------------
# Deterministic parameter init (shapes as in LiftBlock.__init__)
# ---------------------------------------------------------------------------
def init_params(key, in_channels, out_channels, latent_dim, modes1, modes2):
    ks = jax.random.split(key, 7)
    ky_full = 2 * modes1 - 1

    def cuniform(kr, ki, shape, bound):
        return (jax.random.uniform(kr, shape, jnp.float32, -bound, bound)
                + 1j * jax.random.uniform(ki, shape, jnp.float32, -bound, bound)
                ).astype(jnp.complex64)

    # kaiming_uniform_(a=sqrt(5)) -> bound = 1/sqrt(fan_in)
    b_y0 = 1.0 / math.sqrt(latent_dim * (modes1 - 1) * 1)
    b_yx = 1.0 / math.sqrt(latent_dim * ky_full * (modes2 - 1))
    b_00 = 1.0 / math.sqrt(latent_dim)
    w_y0 = cuniform(ks[0], ks[1], (in_channels, latent_dim, modes1 - 1, 1), b_y0)
    w_yposx = cuniform(ks[2], ks[3],
                       (in_channels, latent_dim, ky_full, modes2 - 1), b_yx)
    w_00 = jax.random.uniform(ks[4], (in_channels, latent_dim, 1, 1),
                              jnp.float32, -b_00, b_00)
    spectral_weights = build_spectral_weights(
        w_y0, w_00, w_yposx, in_channels, latent_dim, modes1, modes2)

    # Conv2d(latent_dim, out_channels, 3, padding=1) default PyTorch init.
    fan_in = latent_dim * 9
    bw = 1.0 / math.sqrt(fan_in)
    conv_w = jax.random.uniform(ks[5], (out_channels, latent_dim, 3, 3),
                                jnp.float32, -bw, bw)
    conv_b = jax.random.uniform(ks[6], (out_channels,), jnp.float32, -bw, bw)

    return dict(spectral_weights=spectral_weights,
                bn_gamma=jnp.ones((latent_dim,), jnp.float32),
                bn_beta=jnp.zeros((latent_dim,), jnp.float32),
                conv_w=conv_w, conv_b=conv_b)


# ---------------------------------------------------------------------------
# Pure-JAX reference (same math, no Pallas) for a sanity check
# ---------------------------------------------------------------------------
def reference_forward(x, params, *, modes1, modes2, out_size):
    B, _, H, W = x.shape
    in_size = W
    weights = params["spectral_weights"]
    latent = weights.shape[1]
    freq0_in = _zero_freq_index(H)
    x_ft = jnp.fft.fftshift(jnp.fft.rfft2(x, norm="ortho"), axes=-2)
    x_ft = x_ft[..., freq0_in - modes1 + 1:freq0_in + modes1, :modes2]
    out_modes = jnp.einsum("bixy,ioxy->boxy", x_ft, weights,
                           precision=jax.lax.Precision.HIGHEST)
    freq0_out = _zero_freq_index(out_size)
    out_ft = jnp.zeros((B, latent, out_size, out_size // 2 + 1), jnp.complex64)
    out_ft = out_ft.at[..., freq0_out - modes1 + 1:freq0_out + modes1,
                       :modes2].set(out_modes)
    y = jnp.fft.irfft2(jnp.fft.ifftshift(out_ft, axes=-2),
                       s=(out_size, out_size), norm="ortho") * (out_size / in_size)
    y = y.astype(jnp.float32)
    mean = jnp.mean(y, axis=(0, 2, 3), keepdims=True)
    var = jnp.mean(jnp.square(y - mean), axis=(0, 2, 3), keepdims=True)
    y_bn = (y - mean) / jnp.sqrt(var + 1e-5)
    y_bn = (y_bn * params["bn_gamma"][None, :, None, None]
            + params["bn_beta"][None, :, None, None])
    a = jax.nn.gelu(y_bn, approximate=False)
    out = jax.lax.conv_general_dilated(
        a, params["conv_w"], window_strides=(1, 1), padding="SAME",
        dimension_numbers=("NCHW", "OIHW", "NCHW"))
    return out + params["conv_b"][None, :, None, None]


if __name__ == "__main__":
    B, Cin, H, W = 2, 4, 16, 16
    out_channels, out_size = 3, 16
    modes1, modes2, latent_dim = 5, 5, 16      # latent_dim matches LiftBlock default

    key = jax.random.PRNGKey(0)
    kx, kp = jax.random.split(key)
    x = jax.random.normal(kx, (B, Cin, H, W), jnp.float32)
    params = init_params(kp, Cin, out_channels, latent_dim, modes1, modes2)

    fwd = jax.jit(lambda xx: lift_block_forward(
        xx, params, modes1=modes1, modes2=modes2, out_size=out_size))
    out = jax.block_until_ready(fwd(x))
    assert out.shape == (B, out_channels, out_size, out_size)

    ref_fn = jax.jit(lambda xx: reference_forward(
        xx, params, modes1=modes1, modes2=modes2, out_size=out_size))
    ref = jax.block_until_ready(ref_fn(x))
    max_err = float(np.max(np.abs(np.asarray(out) - np.asarray(ref))))
    assert np.allclose(np.asarray(out), np.asarray(ref), rtol=5e-3, atol=5e-3), max_err

    print("KERNEL_OK")
</pallas_src>

<mosaic_0001>
module attributes {stable_mosaic.version = 11 : i64} {
  func.func @_spectral_mul_kernel(%arg0: i32, %arg1: memref<1x4x128xf32, #tpu.memory_space<vmem>>, %arg2: memref<1x4x128xf32, #tpu.memory_space<vmem>>, %arg3: memref<4x16x128xf32, #tpu.memory_space<vmem>>, %arg4: memref<4x16x128xf32, #tpu.memory_space<vmem>>, %arg5: memref<4x16x128xf32, #tpu.memory_space<vmem>>, %arg6: memref<1x16x128xf32, #tpu.memory_space<vmem>>, %arg7: memref<1x16x128xf32, #tpu.memory_space<vmem>>) attributes {dimension_semantics = [#tpu.dimension_semantics<parallel>], iteration_bounds = array<i64: 2>, scalar_prefetch = 0 : i64, scratch_operands = 0 : i64, tpu.core_type = #tpu.core_type<tc>, window_params = [{transform_indices = @transform_0, window_bounds = array<i64: 1, 4, 128>}, {transform_indices = @transform_1, window_bounds = array<i64: 1, 4, 128>}, {pipeline_mode = #tpu.pipeline_mode<synchronous>, transform_indices = @transform_2, window_bounds = array<i64: 4, 16, 128>}, {pipeline_mode = #tpu.pipeline_mode<synchronous>, transform_indices = @transform_3, window_bounds = array<i64: 4, 16, 128>}, {pipeline_mode = #tpu.pipeline_mode<synchronous>, transform_indices = @transform_4, window_bounds = array<i64: 4, 16, 128>}, {transform_indices = @transform_5, window_bounds = array<i64: 1, 16, 128>}, {transform_indices = @transform_6, window_bounds = array<i64: 1, 16, 128>}]} {
    %c0 = arith.constant 0 : index
    %c0_0 = arith.constant 0 : index
    %c0_1 = arith.constant 0 : index
    %0 = vector.load %arg1[%c0, %c0_0, %c0_1] : memref<1x4x128xf32, #tpu.memory_space<vmem>>, vector<1x4x128xf32>
    %c0_2 = arith.constant 0 : index
    %c0_3 = arith.constant 0 : index
    %c0_4 = arith.constant 0 : index
    %1 = vector.load %arg2[%c0_2, %c0_3, %c0_4] : memref<1x4x128xf32, #tpu.memory_space<vmem>>, vector<1x4x128xf32>
    %2 = arith.addf %0, %1 : vector<1x4x128xf32>
    %cst = arith.constant 0.000000e+00 : f32
    %3 = vector.broadcast %cst : f32 to vector<1x16x128xf32>
    %cst_5 = arith.constant 0.000000e+00 : f32
    %4 = vector.broadcast %cst_5 : f32 to vector<1x16x128xf32>
    %c0_6 = arith.constant 0 : index
    %c0_7 = arith.constant 0 : index
    %c0_8 = arith.constant 0 : index
    %5 = vector.load %arg3[%c0_6, %c0_7, %c0_8] : memref<4x16x128xf32, #tpu.memory_space<vmem>>, vector<1x16x128xf32>
    %6 = vector.shape_cast %5 : vector<1x16x128xf32> to vector<16x128xf32>
    %7 = vector.shape_cast %6 : vector<16x128xf32> to vector<1x16x128xf32>
    %c0_9 = arith.constant 0 : index
    %c0_10 = arith.constant 0 : index
    %c0_11 = arith.constant 0 : index
    %8 = vector.load %arg4[%c0_9, %c0_10, %c0_11] : memref<4x16x128xf32, #tpu.memory_space<vmem>>, vector<1x16x128xf32>
    %9 = vector.shape_cast %8 : vector<1x16x128xf32> to vector<16x128xf32>
    %10 = vector.shape_cast %9 : vector<16x128xf32> to vector<1x16x128xf32>
    %c0_12 = arith.constant 0 : index
    %c0_13 = arith.constant 0 : index
    %c0_14 = arith.constant 0 : index
    %11 = vector.load %arg5[%c0_12, %c0_13, %c0_14] : memref<4x16x128xf32, #tpu.memory_space<vmem>>, vector<1x16x128xf32>
    %12 = vector.shape_cast %11 : vector<1x16x128xf32> to vector<16x128xf32>
    %13 = vector.shape_cast %12 : vector<16x128xf32> to vector<1x16x128xf32>
    %14 = vector.extract_strided_slice %2 {offsets = [0, 0, 0], sizes = [1, 1, 128], strides = [1, 1, 1]} : vector<1x4x128xf32> to vector<1x1x128xf32>
    %15 = vector.broadcast %14 : vector<1x1x128xf32> to vector<1x16x128xf32>
    %16 = arith.mulf %15, %7 : vector<1x16x128xf32>
    %17 = vector.extract_strided_slice %1 {offsets = [0, 0, 0], sizes = [1, 1, 128], strides = [1, 1, 1]} : vector<1x4x128xf32> to vector<1x1x128xf32>
    %18 = vector.broadcast %17 : vector<1x1x128xf32> to vector<1x16x128xf32>
    %19 = arith.mulf %18, %13 : vector<1x16x128xf32>
    %20 = arith.subf %16, %19 : vector<1x16x128xf32>
    %21 = arith.addf %3, %20 : vector<1x16x128xf32>
    %22 = vector.extract_strided_slice %0 {offsets = [0, 0, 0], sizes = [1, 1, 128], strides = [1, 1, 1]} : vector<1x4x128xf32> to vector<1x1x128xf32>
    %23 = vector.broadcast %22 : vector<1x1x128xf32> to vector<1x16x128xf32>
    %24 = arith.mulf %23, %10 : vector<1x16x128xf32>
    %25 = arith.addf %16, %24 : vector<1x16x128xf32>
    %26 = arith.addf %4, %25 : vector<1x16x128xf32>
    %c1 = arith.constant 1 : index
    %c0_15 = arith.constant 0 : index
    %c0_16 = arith.constant 0 : index
    %27 = vector.load %arg3[%c1, %c0_15, %c0_16] : memref<4x16x128xf32, #tpu.memory_space<vmem>>, vector<1x16x128xf32>
    %28 = vector.shape_cast %27 : vector<1x16x128xf32> to vector<16x128xf32>
    %29 = vector.shape_cast %28 : vector<16x128xf32> to vector<1x16x128xf32>
    %c1_17 = arith.constant 1 : index
    %c0_18 = arith.constant 0 : index
    %c0_19 = arith.constant 0 : index
    %30 = vector.load %arg4[%c1_17, %c0_18, %c0_19] : memref<4x16x128xf32, #tpu.memory_space<vmem>>, vector<1x16x128xf32>
    %31 = vector.shape_cast %30 : vector<1x16x128xf32> to vector<16x128xf32>
    %32 = vector.shape_cast %31 : vector<16x128xf32> to vector<1x16x128xf32>
    %c1_20 = arith.constant 1 : index
    %c0_21 = arith.constant 0 : index
    %c0_22 = arith.constant 0 : index
    %33 = vector.load %arg5[%c1_20, %c0_21, %c0_22] : memref<4x16x128xf32, #tpu.memory_space<vmem>>, vector<1x16x128xf32>
    %34 = vector.shape_cast %33 : vector<1x16x128xf32> to vector<16x128xf32>
    %35 = vector.shape_cast %34 : vector<16x128xf32> to vector<1x16x128xf32>
    %36 = vector.extract_strided_slice %2 {offsets = [0, 1, 0], sizes = [1, 1, 128], strides = [1, 1, 1]} : vector<1x4x128xf32> to vector<1x1x128xf32>
    %37 = vector.broadcast %36 : vector<1x1x128xf32> to vector<1x16x128xf32>
    %38 = arith.mulf %37, %29 : vector<1x16x128xf32>
    %39 = vector.extract_strided_slice %1 {offsets = [0, 1, 0], sizes = [1, 1, 128], strides = [1, 1, 1]} : vector<1x4x128xf32> to vector<1x1x128xf32>
    %40 = vector.broadcast %39 : vector<1x1x128xf32> to vector<1x16x128xf32>
    %41 = arith.mulf %40, %35 : vector<1x16x128xf32>
    %42 = arith.subf %38, %41 : vector<1x16x128xf32>
    %43 = arith.addf %21, %42 : vector<1x16x128xf32>
    %44 = vector.extract_strided_slice %0 {offsets = [0, 1, 0], sizes = [1, 1, 128], strides = [1, 1, 1]} : vector<1x4x128xf32> to vector<1x1x128xf32>
    %45 = vector.broadcast %44 : vector<1x1x128xf32> to vector<1x16x128xf32>
    %46 = arith.mulf %45, %32 : vector<1x16x128xf32>
    %47 = arith.addf %38, %46 : vector<1x16x128xf32>
    %48 = arith.addf %26, %47 : vector<1x16x128xf32>
    %c2 = arith.constant 2 : index
    %c0_23 = arith.constant 0 : index
    %c0_24 = arith.constant 0 : index
    %49 = vector.load %arg3[%c2, %c0_23, %c0_24] : memref<4x16x128xf32, #tpu.memory_space<vmem>>, vector<1x16x128xf32>
    %50 = vector.shape_cast %49 : vector<1x16x128xf32> to vector<16x128xf32>
    %51 = vector.shape_cast %50 : vector<16x128xf32> to vector<1x16x128xf32>
    %c2_25 = arith.constant 2 : index
    %c0_26 = arith.constant 0 : index
    %c0_27 = arith.constant 0 : index
    %52 = vector.load %arg4[%c2_25, %c0_26, %c0_27] : memref<4x16x128xf32, #tpu.memory_space<vmem>>, vector<1x16x128xf32>
    %53 = vector.shape_cast %52 : vector<1x16x128xf32> to vector<16x128xf32>
    %54 = vector.shape_cast %53 : vector<16x128xf32> to vector<1x16x128xf32>
    %c2_28 = arith.constant 2 : index
    %c0_29 = arith.constant 0 : index
    %c0_30 = arith.constant 0 : index
    %55 = vector.load %arg5[%c2_28, %c0_29, %c0_30] : memref<4x16x128xf32, #tpu.memory_space<vmem>>, vector<1x16x128xf32>
    %56 = vector.shape_cast %55 : vector<1x16x128xf32> to vector<16x128xf32>
    %57 = vector.shape_cast %56 : vector<16x128xf32> to vector<1x16x128xf32>
    %58 = vector.extract_strided_slice %2 {offsets = [0, 2, 0], sizes = [1, 1, 128], strides = [1, 1, 1]} : vector<1x4x128xf32> to vector<1x1x128xf32>
    %59 = vector.broadcast %58 : vector<1x1x128xf32> to vector<1x16x128xf32>
    %60 = arith.mulf %59, %51 : vector<1x16x128xf32>
    %61 = vector.extract_strided_slice %1 {offsets = [0, 2, 0], sizes = [1, 1, 128], strides = [1, 1, 1]} : vector<1x4x128xf32> to vector<1x1x128xf32>
    %62 = vector.broadcast %61 : vector<1x1x128xf32> to vector<1x16x128xf32>
    %63 = arith.mulf %62, %57 : vector<1x16x128xf32>
    %64 = arith.subf %60, %63 : vector<1x16x128xf32>
    %65 = arith.addf %43, %64 : vector<1x16x128xf32>
    %66 = vector.extract_strided_slice %0 {offsets = [0, 2, 0], sizes = [1, 1, 128], strides = [1, 1, 1]} : vector<1x4x128xf32> to vector<1x1x128xf32>
    %67 = vector.broadcast %66 : vector<1x1x128xf32> to vector<1x16x128xf32>
    %68 = arith.mulf %67, %54 : vector<1x16x128xf32>
    %69 = arith.addf %60, %68 : vector<1x16x128xf32>
    %70 = arith.addf %48, %69 : vector<1x16x128xf32>
    %c3 = arith.constant 3 : index
    %c0_31 = arith.constant 0 : index
    %c0_32 = arith.constant 0 : index
    %71 = vector.load %arg3[%c3, %c0_31, %c0_32] : memref<4x16x128xf32, #tpu.memory_space<vmem>>, vector<1x16x128xf32>
    %72 = vector.shape_cast %71 : vector<1x16x128xf32> to vector<16x128xf32>
    %73 = vector.shape_cast %72 : vector<16x128xf32> to vector<1x16x128xf32>
    %c3_33 = arith.constant 3 : index
    %c0_34 = arith.constant 0 : index
    %c0_35 = arith.constant 0 : index
    %74 = vector.load %arg4[%c3_33, %c0_34, %c0_35] : memref<4x16x128xf32, #tpu.memory_space<vmem>>, vector<1x16x128xf32>
    %75 = vector.shape_cast %74 : vector<1x16x128xf32> to vector<16x128xf32>
    %76 = vector.shape_cast %75 : vector<16x128xf32> to vector<1x16x128xf32>
    %c3_36 = arith.constant 3 : index
    %c0_37 = arith.constant 0 : index
    %c0_38 = arith.constant 0 : index
    %77 = vector.load %arg5[%c3_36, %c0_37, %c0_38] : memref<4x16x128xf32, #tpu.memory_space<vmem>>, vector<1x16x128xf32>
    %78 = vector.shape_cast %77 : vector<1x16x128xf32> to vector<16x128xf32>
    %79 = vector.shape_cast %78 : vector<16x128xf32> to vector<1x16x128xf32>
    %80 = vector.extract_strided_slice %2 {offsets = [0, 3, 0], sizes = [1, 1, 128], strides = [1, 1, 1]} : vector<1x4x128xf32> to vector<1x1x128xf32>
    %81 = vector.broadcast %80 : vector<1x1x128xf32> to vector<1x16x128xf32>
    %82 = arith.mulf %81, %73 : vector<1x16x128xf32>
    %83 = vector.extract_strided_slice %1 {offsets = [0, 3, 0], sizes = [1, 1, 128], strides = [1, 1, 1]} : vector<1x4x128xf32> to vector<1x1x128xf32>
    %84 = vector.broadcast %83 : vector<1x1x128xf32> to vector<1x16x128xf32>
    %85 = arith.mulf %84, %79 : vector<1x16x128xf32>
    %86 = arith.subf %82, %85 : vector<1x16x128xf32>
    %87 = arith.addf %65, %86 : vector<1x16x128xf32>
    %88 = vector.extract_strided_slice %0 {offsets = [0, 3, 0], sizes = [1, 1, 128], strides = [1, 1, 1]} : vector<1x4x128xf32> to vector<1x1x128xf32>
    %89 = vector.broadcast %88 : vector<1x1x128xf32> to vector<1x16x128xf32>
    %90 = arith.mulf %89, %76 : vector<1x16x128xf32>
    %91 = arith.addf %82, %90 : vector<1x16x128xf32>
    %92 = arith.addf %70, %91 : vector<1x16x128xf32>
    %c0_39 = arith.constant 0 : index
    %c0_40 = arith.constant 0 : index
    %c0_41 = arith.constant 0 : index
    %93 = vector.load %arg6[%c0_39, %c0_40, %c0_41] : memref<1x16x128xf32, #tpu.memory_space<vmem>>, vector<1x16x128xf32>
    tpu.vector_store %arg6[%c0_39, %c0_40, %c0_41], %87 {strides = array<i32>} : memref<1x16x128xf32, #tpu.memory_space<vmem>>, vector<1x16x128xf32>,
    %c0_42 = arith.constant 0 : index
    %c0_43 = arith.constant 0 : index
    %c0_44 = arith.constant 0 : index
    %94 = vector.load %arg7[%c0_42, %c0_43, %c0_44] : memref<1x16x128xf32, #tpu.memory_space<vmem>>, vector<1x16x128xf32>
    tpu.vector_store %arg7[%c0_42, %c0_43, %c0_44], %92 {strides = array<i32>} : memref<1x16x128xf32, #tpu.memory_space<vmem>>, vector<1x16x128xf32>,
    return
  }
  func.func @transform_0(%arg0: i32) -> (i32, i32, i32) {
    %c0_i32 = arith.constant 0 : i32
    %c0_i32_0 = arith.constant 0 : i32
    %c0_i32_1 = arith.constant 0 : i32
    return %arg0, %c0_i32, %c0_i32_0 : i32, i32, i32
  }
  func.func @transform_1(%arg0: i32) -> (i32, i32, i32) {
    %c0_i32 = arith.constant 0 : i32
    %c0_i32_0 = arith.constant 0 : i32
    %c0_i32_1 = arith.constant 0 : i32
    return %arg0, %c0_i32, %c0_i32_0 : i32, i32, i32
  }
  func.func @transform_2(%arg0: i32) -> (i32, i32, i32) {
    %c0_i32 = arith.constant 0 : i32
    %c0_i32_0 = arith.constant 0 : i32
    %c0_i32_1 = arith.constant 0 : i32
    %c0_i32_2 = arith.constant 0 : i32
    return %c0_i32, %c0_i32_0, %c0_i32_1 : i32, i32, i32
  }
  func.func @transform_3(%arg0: i32) -> (i32, i32, i32) {
    %c0_i32 = arith.constant 0 : i32
    %c0_i32_0 = arith.constant 0 : i32
    %c0_i32_1 = arith.constant 0 : i32
    %c0_i32_2 = arith.constant 0 : i32
    return %c0_i32, %c0_i32_0, %c0_i32_1 : i32, i32, i32
  }
  func.func @transform_4(%arg0: i32) -> (i32, i32, i32) {
    %c0_i32 = arith.constant 0 : i32
    %c0_i32_0 = arith.constant 0 : i32
    %c0_i32_1 = arith.constant 0 : i32
    %c0_i32_2 = arith.constant 0 : i32
    return %c0_i32, %c0_i32_0, %c0_i32_1 : i32, i32, i32
  }
  func.func @transform_5(%arg0: i32) -> (i32, i32, i32) {
    %c0_i32 = arith.constant 0 : i32
    %c0_i32_0 = arith.constant 0 : i32
    %c0_i32_1 = arith.constant 0 : i32
    return %arg0, %c0_i32, %c0_i32_0 : i32, i32, i32
  }
  func.func @transform_6(%arg0: i32) -> (i32, i32, i32) {
    %c0_i32 = arith.constant 0 : i32
    %c0_i32_0 = arith.constant 0 : i32
    %c0_i32_1 = arith.constant 0 : i32
    return %arg0, %c0_i32, %c0_i32_0 : i32, i32, i32
  }
}

module attributes {stable_mosaic.version = 11 : i64} {
  func.func @_bn_stats_kernel(%arg0: i32, %arg1: memref<16x256xf32, #tpu.memory_space<vmem>>, %arg2: memref<16x2xf32, #tpu.memory_space<vmem>>) attributes {dimension_semantics = [#tpu.dimension_semantics<arbitrary>], iteration_bounds = array<i64: 2>, scalar_prefetch = 0 : i64, scratch_operands = 0 : i64, tpu.core_type = #tpu.core_type<tc>, window_params = [{transform_indices = @transform_0, window_bounds = array<i64: 16, 256>}, {pipeline_mode = #tpu.pipeline_mode<synchronous>, transform_indices = @transform_1, window_bounds = array<i64: 16, 2>}]} {
    %c0_i32 = arith.constant 0 : i32
    %0 = arith.cmpi eq, %arg0, %c0_i32 : i32
    %1 = arith.extui %0 : i1 to i32
    %c0_i32_0 = arith.constant 0 : i32
    %2 = arith.cmpi ne, %1, %c0_i32_0 : i32
    scf.if %2 {
      %cst_10 = arith.constant 0.000000e+00 : f32
      %15 = vector.broadcast %cst_10 : f32 to vector<16x2xf32>
      %c0_11 = arith.constant 0 : index
      %c0_12 = arith.constant 0 : index
      %16 = vector.load %arg2[%c0_11, %c0_12] : memref<16x2xf32, #tpu.memory_space<vmem>>, vector<16x2xf32>
      tpu.vector_store %arg2[%c0_11, %c0_12], %15 {strides = array<i32>} : memref<16x2xf32, #tpu.memory_space<vmem>>, vector<16x2xf32>,
    } else {
    }
    %c0 = arith.constant 0 : index
    %c0_1 = arith.constant 0 : index
    %3 = vector.load %arg1[%c0, %c0_1] : memref<16x256xf32, #tpu.memory_space<vmem>>, vector<16x256xf32>
    %c0_2 = arith.constant 0 : index
    %c0_3 = arith.constant 0 : index
    %4 = vector.load %arg2[%c0_2, %c0_3] : memref<16x2xf32, #tpu.memory_space<vmem>>, vector<16x1xf32>
    %cst = arith.constant dense<0.000000e+00> : vector<16xf32>
    %5 = vector.multi_reduction <add>, %3, %cst [1] : vector<16x256xf32> to vector<16xf32>
    %6 = vector.shape_cast %5 : vector<16xf32> to vector<16x1xf32>
    %7 = arith.addf %4, %6 : vector<16x1xf32>
    %c0_4 = arith.constant 0 : index
    %c0_5 = arith.constant 0 : index
    %8 = vector.load %arg2[%c0_4, %c0_5] : memref<16x2xf32, #tpu.memory_space<vmem>>, vector<16x1xf32>
    tpu.vector_store %arg2[%c0_4, %c0_5], %7 {strides = array<i32>} : memref<16x2xf32, #tpu.memory_space<vmem>>, vector<16x1xf32>,
    %c0_6 = arith.constant 0 : index
    %c1 = arith.constant 1 : index
    %9 = vector.load %arg2[%c0_6, %c1] : memref<16x2xf32, #tpu.memory_space<vmem>>, vector<16x1xf32>
    %10 = arith.mulf %3, %3 : vector<16x256xf32>
    %cst_7 = arith.constant dense<0.000000e+00> : vector<16xf32>
    %11 = vector.multi_reduction <add>, %10, %cst_7 [1] : vector<16x256xf32> to vector<16xf32>
    %12 = vector.shape_cast %11 : vector<16xf32> to vector<16x1xf32>
    %13 = arith.addf %9, %12 : vector<16x1xf32>
    %c0_8 = arith.constant 0 : index
    %c1_9 = arith.constant 1 : index
    %14 = vector.load %arg2[%c0_8, %c1_9] : memref<16x2xf32, #tpu.memory_space<vmem>>, vector<16x1xf32>
    tpu.vector_store %arg2[%c0_8, %c1_9], %13 {strides = array<i32>} : memref<16x2xf32, #tpu.memory_space<vmem>>, vector<16x1xf32>,
    return
  }
  func.func @transform_0(%arg0: i32) -> (i32, i32) {
    %c0_i32 = arith.constant 0 : i32
    %c0_i32_0 = arith.constant 0 : i32
    return %c0_i32, %arg0 : i32, i32
  }
  func.func @transform_1(%arg0: i32) -> (i32, i32) {
    %c0_i32 = arith.constant 0 : i32
    %c0_i32_0 = arith.constant 0 : i32
    %c0_i32_1 = arith.constant 0 : i32
    return %c0_i32, %c0_i32_0 : i32, i32
  }
}

module attributes {stable_mosaic.version = 11 : i64} {
  func.func @kernel(%arg0: i32, %arg1: memref<16x256xf32, #tpu.memory_space<vmem>>, %arg2: memref<16x1xf32, #tpu.memory_space<vmem>>, %arg3: memref<16x1xf32, #tpu.memory_space<vmem>>, %arg4: memref<3x144xf32, #tpu.memory_space<vmem>>, %arg5: memref<9x256xf32, #tpu.memory_space<vmem>>, %arg6: memref<3x1xf32, #tpu.memory_space<vmem>>, %arg7: memref<3x256xf32, #tpu.memory_space<vmem>>) attributes {dimension_semantics = [#tpu.dimension_semantics<parallel>], iteration_bounds = array<i64: 2>, scalar_prefetch = 0 : i64, scratch_operands = 0 : i64, tpu.core_type = #tpu.core_type<tc>, window_params = [{transform_indices = @transform_0, window_bounds = array<i64: 16, 256>}, {pipeline_mode = #tpu.pipeline_mode<synchronous>, transform_indices = @transform_1, window_bounds = array<i64: 16, 1>}, {pipeline_mode = #tpu.pipeline_mode<synchronous>, transform_indices = @transform_2, window_bounds = array<i64: 16, 1>}, {pipeline_mode = #tpu.pipeline_mode<synchronous>, transform_indices = @transform_3, window_bounds = array<i64: 3, 144>}, {pipeline_mode = #tpu.pipeline_mode<synchronous>, transform_indices = @transform_4, window_bounds = array<i64: 9, 256>}, {pipeline_mode = #tpu.pipeline_mode<synchronous>, transform_indices = @transform_5, window_bounds = array<i64: 3, 1>}, {transform_indices = @transform_6, window_bounds = array<i64: 3, 256>}]} {
    %c0 = arith.constant 0 : index
    %c0_0 = arith.constant 0 : index
    %0 = vector.load %arg1[%c0, %c0_0] : memref<16x256xf32, #tpu.memory_space<vmem>>, vector<16x256xf32>
    %c0_1 = arith.constant 0 : index
    %c0_2 = arith.constant 0 : index
    %1 = vector.load %arg2[%c0_1, %c0_2] : memref<16x1xf32, #tpu.memory_space<vmem>>, vector<16x1xf32>
    %2 = vector.broadcast %1 : vector<16x1xf32> to vector<16x256xf32>
    %3 = arith.mulf %0, %2 : vector<16x256xf32>
    %c0_3 = arith.constant 0 : index
    %c0_4 = arith.constant 0 : index
    %4 = vector.load %arg3[%c0_3, %c0_4] : memref<16x1xf32, #tpu.memory_space<vmem>>, vector<16x1xf32>
    %5 = vector.broadcast %4 : vector<16x1xf32> to vector<16x256xf32>
    %6 = arith.addf %3, %5 : vector<16x256xf32>
    %cst = arith.constant 5.000000e-01 : f32
    %7 = vector.broadcast %cst : f32 to vector<16x256xf32>
    %8 = arith.mulf %7, %6 : vector<16x256xf32>
    %cst_5 = arith.constant 4.471500e-02 : f32
    %9 = vector.broadcast %cst_5 : f32 to vector<16x256xf32>
    %10 = arith.mulf %9, %6 : vector<16x256xf32>
    %11 = arith.mulf %10, %6 : vector<16x256xf32>
    %12 = arith.mulf %11, %6 : vector<16x256xf32>
    %13 = arith.addf %6, %12 : vector<16x256xf32>
    %cst_6 = arith.constant 0.797884583 : f32
    %14 = vector.broadcast %cst_6 : f32 to vector<16x256xf32>
    %15 = arith.mulf %14, %13 : vector<16x256xf32>
    %16 = math.tanh %15 : vector<16x256xf32>
    %cst_7 = arith.constant 1.000000e+00 : f32
    %17 = vector.broadcast %cst_7 : f32 to vector<16x256xf32>
    %18 = arith.addf %17, %16 : vector<16x256xf32>
    %19 = arith.mulf %8, %18 : vector<16x256xf32>
    %c17_i32 = arith.constant 17 : i32
    %20 = tpu.dynamic_rotate %19 by %c17_i32 dim 1 : vector<16x256xf32>, i32 -> vector<16x256xf32>
    %c0_8 = arith.constant 0 : index
    %c0_9 = arith.constant 0 : index
    %21 = vector.load %arg5[%c0_8, %c0_9] : memref<9x256xf32, #tpu.memory_space<vmem>>, vector<1x256xf32>
    %22 = vector.broadcast %21 : vector<1x256xf32> to vector<16x256xf32>
    %23 = arith.mulf %20, %22 : vector<16x256xf32>
    %c16_i32 = arith.constant 16 : i32
    %24 = tpu.dynamic_rotate %19 by %c16_i32 dim 1 : vector<16x256xf32>, i32 -> vector<16x256xf32>
    %c1 = arith.constant 1 : index
    %c0_10 = arith.constant 0 : index
    %25 = vector.load %arg5[%c1, %c0_10] : memref<9x256xf32, #tpu.memory_space<vmem>>, vector<1x256xf32>
    %26 = vector.broadcast %25 : vector<1x256xf32> to vector<16x256xf32>
    %27 = arith.mulf %24, %26 : vector<16x256xf32>
    %c15_i32 = arith.constant 15 : i32
    %28 = tpu.dynamic_rotate %19 by %c15_i32 dim 1 : vector<16x256xf32>, i32 -> vector<16x256xf32>
    %c2 = arith.constant 2 : index
    %c0_11 = arith.constant 0 : index
    %29 = vector.load %arg5[%c2, %c0_11] : memref<9x256xf32, #tpu.memory_space<vmem>>, vector<1x256xf32>
    %30 = vector.broadcast %29 : vector<1x256xf32> to vector<16x256xf32>
    %31 = arith.mulf %28, %30 : vector<16x256xf32>
    %c1_i32 = arith.constant 1 : i32
    %32 = tpu.dynamic_rotate %19 by %c1_i32 dim 1 : vector<16x256xf32>, i32 -> vector<16x256xf32>
    %c3 = arith.constant 3 : index
    %c0_12 = arith.constant 0 : index
    %33 = vector.load %arg5[%c3, %c0_12] : memref<9x256xf32, #tpu.memory_space<vmem>>, vector<1x256xf32>
    %34 = vector.broadcast %33 : vector<1x256xf32> to vector<16x256xf32>
    %35 = arith.mulf %32, %34 : vector<16x256xf32>
    %c255_i32 = arith.constant 255 : i32
    %36 = tpu.dynamic_rotate %19 by %c255_i32 dim 1 : vector<16x256xf32>, i32 -> vector<16x256xf32>
    %c5 = arith.constant 5 : index
    %c0_13 = arith.constant 0 : index
    %37 = vector.load %arg5[%c5, %c0_13] : memref<9x256xf32, #tpu.memory_space<vmem>>, vector<1x256xf32>
    %38 = vector.broadcast %37 : vector<1x256xf32> to vector<16x256xf32>
    %39 = arith.mulf %36, %38 : vector<16x256xf32>
    %c241_i32 = arith.constant 241 : i32
    %40 = tpu.dynamic_rotate %19 by %c241_i32 dim 1 : vector<16x256xf32>, i32 -> vector<16x256xf32>
    %c6 = arith.constant 6 : index
    %c0_14 = arith.constant 0 : index
    %41 = vector.load %arg5[%c6, %c0_14] : memref<9x256xf32, #tpu.memory_space<vmem>>, vector<1x256xf32>
    %42 = vector.broadcast %41 : vector<1x256xf32> to vector<16x256xf32>
    %43 = arith.mulf %40, %42 : vector<16x256xf32>
    %c240_i32 = arith.constant 240 : i32
    %44 = tpu.dynamic_rotate %19 by %c240_i32 dim 1 : vector<16x256xf32>, i32 -> vector<16x256xf32>
    %c7 = arith.constant 7 : index
    %c0_15 = arith.constant 0 : index
    %45 = vector.load %arg5[%c7, %c0_15] : memref<9x256xf32, #tpu.memory_space<vmem>>, vector<1x256xf32>
    %46 = vector.broadcast %45 : vector<1x256xf32> to vector<16x256xf32>
    %47 = arith.mulf %44, %46 : vector<16x256xf32>
    %c239_i32 = arith.constant 239 : i32
    %48 = tpu.dynamic_rotate %19 by %c239_i32 dim 1 : vector<16x256xf32>, i32 -> vector<16x256xf32>
    %c8 = arith.constant 8 : index
    %c0_16 = arith.constant 0 : index
    %49 = vector.load %arg5[%c8, %c0_16] : memref<9x256xf32, #tpu.memory_space<vmem>>, vector<1x256xf32>
    %50 = vector.broadcast %49 : vector<1x256xf32> to vector<16x256xf32>
    %51 = arith.mulf %48, %50 : vector<16x256xf32>
    %52 = tpu.concatenate %23, %27, %31, %35, %19, %39, %43, %47, %51 in 0 : vector<16x256xf32>, vector<16x256xf32>, vector<16x256xf32>, vector<16x256xf32>, vector<16x256xf32>, vector<16x256xf32>, vector<16x256xf32>, vector<16x256xf32>, vector<16x256xf32> -> vector<144x256xf32>
    %c0_17 = arith.constant 0 : index
    %c0_18 = arith.constant 0 : index
    %53 = vector.load %arg4[%c0_17, %c0_18] : memref<3x144xf32, #tpu.memory_space<vmem>>, vector<3x144xf32>
    %cst_19 = arith.constant dense<0.000000e+00> : vector<3x256xf32>
    %54 = tpu.matmul %53, %52, %cst_19 {dimension_numbers = #tpu.dot_dimension_numbers<[1], [0], [0], [1], [0, 0, 1, 1], [], []>} : vector<3x144xf32>, vector<144x256xf32>, vector<3x256xf32> -> vector<3x256xf32>
    %c0_20 = arith.constant 0 : index
    %c0_21 = arith.constant 0 : index
    %55 = vector.load %arg6[%c0_20, %c0_21] : memref<3x1xf32, #tpu.memory_space<vmem>>, vector<3x1xf32>
    %56 = vector.broadcast %55 : vector<3x1xf32> to vector<3x256xf32>
    %57 = arith.addf %54, %56 : vector<3x256xf32>
    %c0_22 = arith.constant 0 : index
    %c0_23 = arith.constant 0 : index
    %58 = vector.load %arg7[%c0_22, %c0_23] : memref<3x256xf32, #tpu.memory_space<vmem>>, vector<3x256xf32>
    tpu.vector_store %arg7[%c0_22, %c0_23], %57 {strides = array<i32>} : memref<3x256xf32, #tpu.memory_space<vmem>>, vector<3x256xf32>,
    return
  }
  func.func @transform_0(%arg0: i32) -> (i32, i32) {
    %c0_i32 = arith.constant 0 : i32
    %c0_i32_0 = arith.constant 0 : i32
    return %c0_i32, %arg0 : i32, i32
  }
  func.func @transform_1(%arg0: i32) -> (i32, i32) {
    %c0_i32 = arith.constant 0 : i32
    %c0_i32_0 = arith.constant 0 : i32
    %c0_i32_1 = arith.constant 0 : i32
    return %c0_i32, %c0_i32_0 : i32, i32
  }
  func.func @transform_2(%arg0: i32) -> (i32, i32) {
    %c0_i32 = arith.constant 0 : i32
    %c0_i32_0 = arith.constant 0 : i32
    %c0_i32_1 = arith.constant 0 : i32
    return %c0_i32, %c0_i32_0 : i32, i32
  }
  func.func @transform_3(%arg0: i32) -> (i32, i32) {
    %c0_i32 = arith.constant 0 : i32
    %c0_i32_0 = arith.constant 0 : i32
    %c0_i32_1 = arith.constant 0 : i32
    return %c0_i32, %c0_i32_0 : i32, i32
  }
  func.func @transform_4(%arg0: i32) -> (i32, i32) {
    %c0_i32 = arith.constant 0 : i32
    %c0_i32_0 = arith.constant 0 : i32
    %c0_i32_1 = arith.constant 0 : i32
    return %c0_i32, %c0_i32_0 : i32, i32
  }
  func.func @transform_5(%arg0: i32) -> (i32, i32) {
    %c0_i32 = arith.constant 0 : i32
    %c0_i32_0 = arith.constant 0 : i32
    %c0_i32_1 = arith.constant 0 : i32
    return %c0_i32, %c0_i32_0 : i32, i32
  }
  func.func @transform_6(%arg0: i32) -> (i32, i32) {
    %c0_i32 = arith.constant 0 : i32
    %c0_i32_0 = arith.constant 0 : i32
    return %c0_i32, %arg0 : i32, i32
  }
}

</mosaic_0001>

<bundles_post_ra>
// kernel: _lambda_.3
= control target key start
LH: loop header
LB: loop body
LE: loop exit
PB: predicated region body
PF: predicated region fallthrough
CT: control target
= control target key end

     0   :  { %s607_s21 = smov 0   ;;  %s722_s0 = inlined_call_operand.vmem [shape: f32[2,4,128], index: 0, kind: input, shape index: {}]   ;;  %s723_s1 = inlined_call_operand.vmem [shape: f32[2,4,128], index: 1, kind: input, shape index: {}]   ;;  %s724_s2 = inlined_call_operand.vmem [shape: f32[4,16,128], index: 2, kind: input, shape index: {}]   ;;  %s725_s3 = inlined_call_operand.vmem [shape: f32[4,16,128], index: 3, kind: input, shape index: {}]   ;;  %s726_s4 = inlined_call_operand.vmem [shape: f32[4,16,128], index: 4, kind: input, shape index: {}]   ;;  %s727_s5 = inlined_call_operand.vmem [shape: f32[2,16,128], index: 5, kind: output, shape index: {0}]   ;;  %s728_s6 = inlined_call_operand.vmem [shape: f32[2,16,128], index: 6, kind: output, shape index: {1}]  }
   0x1 LB: > { %s523_s22 = sadd.s32 4294967295, %s570_s21   ;;  %p527_p0 = scmp.ge.s32.totalorder %s570_s21, 1  ;;  %s570_s21 = sphi %s607_s21, %s17_s21  }
   0x2   : > { %p223_p1 = scmp.lt.s32.totalorder %s570_s21, 3 }
   0x4   : > { %p224_p2 = pnand %p527_p0, %p223_p1 }
   0x5   : > { %p261_p3 = scmp.lt.s32.totalorder (!%p224_p2), %s523_s22, 1  ;;  %v288_v0 = vlaneseq (!%p224_p2)  ;;  %v286_v6 = vld [vmem:[%s726_s4] sm:$0xff] (!%p224_p2)  ;;  %v538_v10 = vld [vmem:[%s726_s4 + $0x10] sm:$0xff] (!%p224_p2)  ;;  %v283_v20 = vld [vmem:[%s724_s2 + $0x8] sm:$0xff] (!%p224_p2) }
   0x6   : > { %227 = sbr.rel (%p224_p2) target bundleno = 40 (0x28), region = 40  ;;  %v282_v9 = vld [vmem:[%s724_s2] sm:$0xff] (!%p224_p2)  ;;  %v534_v13 = vld [vmem:[%s724_s2 + $0x10] sm:$0xff] (!%p224_p2)  ;;  %v287_v21 = vld [vmem:[%s726_s4 + $0x8] sm:$0xff] (!%p224_p2) }
   0x7   : > { %v289_v1 = vshrl.u32 (!%p224_p2), %v288_v0, 7  ;;  %v544_v15 = vld [vmem:[%s726_s4 + $0x20] sm:$0xff] (!%p224_p2)  ;;  %v550_v17 = vld [vmem:[%s726_s4 + $0x30] sm:$0xff] (!%p224_p2)  ;;  %v535_v30 = vld [vmem:[%s724_s2 + $0x18] sm:$0xff] (!%p224_p2) }
   0x8   : > { %v540_v18 = vld [vmem:[%s724_s2 + $0x20] sm:$0xff] (!%p224_p2)  ;;  %v546_v29 = vld [vmem:[%s724_s2 + $0x30] sm:$0xff] (!%p224_p2)  ;;  %v539_v31 = vld [vmem:[%s726_s4 + $0x18] sm:$0xff] (!%p224_p2) }
   0x9   : > { %v290_v2 = vsub.s32 (!%p224_p2), 0, %v289_v1  ;;  %v325_v3 = vsub.s32 (!%p224_p2), 1, %v289_v1  ;;  %v360_v4 = vsub.s32 (!%p224_p2), 2, %v289_v1  ;;  %v618_v5 = vsub.s32 (!%p224_p2), 3, %v289_v1  ;;  %v541_v36 = vld [vmem:[%s724_s2 + $0x28] sm:$0xff] (!%p224_p2)  ;;  %v547_v46 = vld [vmem:[%s724_s2 + $0x38] sm:$0xff] (!%p224_p2) }
   0xa   : > { %v545_v41 = vld [vmem:[%s726_s4 + $0x28] sm:$0xff] (!%p224_p2)  ;;  %v551_v47 = vld [vmem:[%s726_s4 + $0x38] sm:$0xff] (!%p224_p2)  ;;  %v284_v48 = vld [vmem:[%s725_s3] sm:$0xff] (!%p224_p2) }
   0xb   : > { %v536_v53 = vld [vmem:[%s725_s3 + $0x10] sm:$0xff] (!%p224_p2)  ;;  %v542_v54 = vld [vmem:[%s725_s3 + $0x20] sm:$0xff] (!%p224_p2)  ;;  %v285_v63 = vld [vmem:[%s725_s3 + $0x8] sm:$0xff] (!%p224_p2) }
   0xd   : > { %s730_s22 = smov (!%p261_p3, %s523_s22), 1 }
   0xe   : > { %s528_s23 = sshll.u32 %s730_s22, 2  ;;  %s554_s24 = sshll.u32 %s730_s22, 4 }
   0xf   : > { %s264_s26 = scalar_lea.vmem %s722_s0, %s528_s23  ;;  %s268_s29 = scalar_lea.vmem %s723_s1, %s528_s23 }
  0x10   : > { %v629_v7 = vld [vmem:[%s264_s26] sm:$0xf]  ;;  %s273_s13 = scalar_lea.vmem %s727_s5, %s554_s24  ;;  %s278_s16 = scalar_lea.vmem %s728_s6, %s554_s24 }
  0x11   : > { %v280_v8 = vld [vmem:[%s268_s29] sm:$0xf]  ;;  %v307_v22 = vrot.slane %v629_v7, %v290_v2  ;;  %v342_v23 = vrot.slane %v629_v7, %v325_v3  ;;  %v377_v24 = vrot.slane %v629_v7, %v360_v4 }
  0x12   : > { %v281_v11 = vadd.f32 %v280_v8, %v629_v7  ;;  %v297_v12 = vrot.slane %v280_v8, %v290_v2  ;;  %v332_v14 = vrot.slane %v280_v8, %v325_v3  ;;  %v367_v16 = vrot.slane %v280_v8, %v360_v4 }
  0x13   : > { %v402_v19 = vrot.slane %v280_v8, %v618_v5  ;;  %v308_v62 = vmul.f32 %v307_v22, %v284_v48  ;;  %v543_v8 = vld [vmem:[%s725_s3 + $0x28] sm:$0xff] }
  0x14   : > { %v291_v25 = vrot.slane %v281_v11, %v290_v2  ;;  %v298_v26 = vmul.f32 %v297_v12, %v286_v6  ;;  %v326_v27 = vrot.slane %v281_v11, %v325_v3  ;;  %v333_v28 = vmul.f32 %v538_v10, %v332_v14  ;;  %v537_v6 = vld [vmem:[%s725_s3 + $0x18] sm:$0xff] }
  0x15   : > { %v361_v32 = vrot.slane %v281_v11, %v360_v4  ;;  %v368_v33 = vmul.f32 %v544_v15, %v367_v16  ;;  %v396_v34 = vrot.slane %v281_v11, %v618_v5  ;;  %v403_v35 = vmul.f32 %v550_v17, %v402_v19  ;;  %v548_v4 = vld [vmem:[%s725_s3 + $0x30] sm:$0xff] }
  0x16   : > { %v292_v37 = vmul.f32 %v291_v25, %v282_v9  ;;  %v327_v38 = vmul.f32 %v534_v13, %v326_v27  ;;  %v293_v39 = vmul.f32 %v291_v25, %v283_v20  ;;  %v299_v40 = vmul.f32 %v297_v12, %v287_v21  ;;  %v549_v13 = vld [vmem:[%s725_s3 + $0x38] sm:$0xff] }
  0x17   : > { %v362_v42 = vmul.f32 %v540_v18, %v361_v32  ;;  %v397_v43 = vmul.f32 %v546_v29, %v396_v34  ;;  %v328_v44 = vmul.f32 %v535_v30, %v326_v27  ;;  %v334_v45 = vmul.f32 %v539_v31, %v332_v14 }
  0x18   : > { %v300_v49 = vsub.f32 %v292_v37, %v298_v26  ;;  %v335_v50 = vsub.f32 %v327_v38, %v333_v28  ;;  %v301_v51 = vsub.f32 %v293_v39, %v299_v40  ;;  %v363_v52 = vmul.f32 %v541_v36, %v361_v32 }
  0x19   : > { %v370_v55 = vsub.f32 %v362_v42, %v368_v33  ;;  %v405_v56 = vsub.f32 %v397_v43, %v403_v35  ;;  %v336_v57 = vsub.f32 %v328_v44, %v334_v45  ;;  %v369_v58 = vmul.f32 %v545_v41, %v367_v16 }
  0x1a   : > { %v337_v59 = vadd.f32 %v335_v50, %v300_v49  ;;  %v398_v60 = vmul.f32 %v547_v46, %v396_v34  ;;  %v404_v61 = vmul.f32 %v551_v47, %v402_v19  ;;  %v343_v2 = vmul.f32 %v536_v53, %v342_v23 }
  0x1b   : > { %v338_v0 = vadd.f32 %v336_v57, %v301_v51  ;;  %v371_v1 = vsub.f32 %v363_v52, %v369_v58  ;;  %v378_v3 = vmul.f32 %v542_v54, %v377_v24  ;;  %v310_v11 = vadd.f32 %v308_v62, %v292_v37 }
  0x1c   : > { %v372_v9 = vadd.f32 %v370_v55, %v337_v59  ;;  %v406_v10 = vsub.f32 %v398_v60, %v404_v61  ;;  %v412_v12 = vrot.slane %v629_v7, %v618_v5  ;;  %v345_v15 = vadd.f32 %v343_v2, %v327_v38 }
  0x1d   : > { %v373_v14 = vadd.f32 %v371_v1, %v338_v0  ;;  %v380_v16 = vadd.f32 %v378_v3, %v362_v42  ;;  %v309_v17 = vmul.f32 %v307_v22, %v285_v63  ;;  %v344_v20 = vmul.f32 %v537_v6, %v342_v23 }
  0x1e   : > { %v407_v18 = vadd.f32 %v405_v56, %v372_v9  ;;  %v413_v19 = vmul.f32 %v548_v4, %v412_v12  ;;  %v379_v21 = vmul.f32 %v543_v8, %v377_v24  ;;  %v347_v5 = vadd.f32 %v345_v15, %v310_v11 }
  0x1f   : > { %v408_v25 = vadd.f32 %v406_v10, %v373_v14  ;;  %v311_v7 = vadd.f32 %v309_v17, %v293_v39  ;;  %v414_v26 = vmul.f32 %v549_v13, %v412_v12  ;;  %v346_v28 = vadd.f32 %v344_v20, %v328_v44 }
  0x20   : > { %419 = vst [vmem:[%s273_s13] sm:$0xff] %v407_v18  ;;  %v415_v27 = vadd.f32 %v413_v19, %v397_v43  ;;  %v381_v29 = vadd.f32 %v379_v21, %v363_v52  ;;  %v382_v30 = vadd.f32 %v380_v16, %v347_v5 }
  0x21   : > { %420 = vst [vmem:[%s273_s13 + $0x8] sm:$0xff] %v408_v25  ;;  %v348_v22 = vadd.f32 %v346_v28, %v311_v7  ;;  %v416_v31 = vadd.f32 %v414_v26, %v398_v60 }
  0x22   : > { %v417_v32 = vadd.f32 %v415_v27, %v382_v30 }
  0x23   : > { %v383_v23 = vadd.f32 %v381_v29, %v348_v22 }
  0x24   : > { %421 = vst [vmem:[%s278_s16] sm:$0xff] %v417_v32 }
  0x25   : > { %v418_v24 = vadd.f32 %v416_v31, %v383_v23 }
  0x27   : > { %422 = vst [vmem:[%s278_s16 + $0x8] sm:$0xff] %v418_v24 }
  0x28 PF: > { %s17_s21 = sadd.s32 1, %s570_s21  }
  0x29   : > { %p14_p4 = scmp.ge.s32.totalorder %s17_s21, 4  }
  0x2b   :  { %16 = sbr.rel (!%p14_p4) target bundleno = 1 (0x1), region = 94 }

// kernel: reverse.1
= control target key start
LH: loop header
LB: loop body
LE: loop exit
PB: predicated region body
PF: predicated region fallthrough
CT: control target
= control target key end

     0   :  { %s344_s0 = inlined_call_operand.vmem [shape: f32[2,16,16,7], index: 0, kind: input, shape index: {}]   ;;  %s345_s1 = inlined_call_operand.vmem [shape: f32[2,16,16,7], index: 1, kind: output, shape index: {}]  }
   0x1   :  { %v112_v0 = vld [vmem:[%s344_s0 + $0x60] sm:$0xff]  ;;  %v113_v1 = vld [vmem:[%s344_s0 + $0xd0] sm:$0xff]  ;;  %v138_v14 = vld [vmem:[%s344_s0 + $0x68] sm:$0xff] }
   0x2   :  { %v115_v2 = vld [vmem:[%s344_s0 + $0x50] sm:$0xff]  ;;  %4 = vst [vmem:[%s345_s1] sm:$0xff] %v112_v0  ;;  %114 = vst [vmem:[%s345_s1 + $0x70] sm:$0xff] %v113_v1  ;;  %v117_v3 = vld [vmem:[%s344_s0 + $0xc0] sm:$0xff] }
   0x3   :  { %116 = vst [vmem:[%s345_s1 + $0x10] sm:$0xff] %v115_v2  ;;  %v119_v4 = vld [vmem:[%s344_s0 + $0x40] sm:$0xff]  ;;  %v121_v5 = vld [vmem:[%s344_s0 + $0xb0] sm:$0xff]  ;;  %118 = vst [vmem:[%s345_s1 + $0x80] sm:$0xff] %v117_v3 }
   0x4   :  { %120 = vst [vmem:[%s345_s1 + $0x20] sm:$0xff] %v119_v4  ;;  %122 = vst [vmem:[%s345_s1 + $0x90] sm:$0xff] %v121_v5  ;;  %v123_v6 = vld [vmem:[%s344_s0 + $0x30] sm:$0xff]  ;;  %v125_v7 = vld [vmem:[%s344_s0 + $0xa0] sm:$0xff] }
   0x5   :  { %v127_v8 = vld [vmem:[%s344_s0 + $0x20] sm:$0xff]  ;;  %124 = vst [vmem:[%s345_s1 + $0x30] sm:$0xff] %v123_v6  ;;  %126 = vst [vmem:[%s345_s1 + $0xa0] sm:$0xff] %v125_v7  ;;  %v129_v9 = vld [vmem:[%s344_s0 + $0x90] sm:$0xff] }
   0x6   :  { %128 = vst [vmem:[%s345_s1 + $0x40] sm:$0xff] %v127_v8  ;;  %v131_v10 = vld [vmem:[%s344_s0 + $0x10] sm:$0xff]  ;;  %v133_v11 = vld [vmem:[%s344_s0 + $0x80] sm:$0xff]  ;;  %130 = vst [vmem:[%s345_s1 + $0xb0] sm:$0xff] %v129_v9 }
   0x7   :  { %132 = vst [vmem:[%s345_s1 + $0x50] sm:$0xff] %v131_v10  ;;  %134 = vst [vmem:[%s345_s1 + $0xc0] sm:$0xff] %v133_v11  ;;  %v49_v12 = vld [vmem:[%s344_s0] sm:$0xff]  ;;  %v136_v13 = vld [vmem:[%s344_s0 + $0x70] sm:$0xff] }
   0x8   :  { %135 = vst [vmem:[%s345_s1 + $0x60] sm:$0xff] %v49_v12  ;;  %137 = vst [vmem:[%s345_s1 + $0xd0] sm:$0xff] %v136_v13  ;;  %v140_v15 = vld [vmem:[%s344_s0 + $0xd8] sm:$0xff]  ;;  %v144_v17 = vld [vmem:[%s344_s0 + $0xc8] sm:$0xff] }
   0x9   :  { %139 = vst [vmem:[%s345_s1 + $0x8] sm:$0xff] %v138_v14  ;;  %v142_v16 = vld [vmem:[%s344_s0 + $0x58] sm:$0xff]  ;;  %141 = vst [vmem:[%s345_s1 + $0x78] sm:$0xff] %v140_v15  ;;  %v146_v18 = vld [vmem:[%s344_s0 + $0x48] sm:$0xff] }
   0xa   :  { %143 = vst [vmem:[%s345_s1 + $0x18] sm:$0xff] %v142_v16  ;;  %145 = vst [vmem:[%s345_s1 + $0x88] sm:$0xff] %v144_v17  ;;  %v148_v19 = vld [vmem:[%s344_s0 + $0xb8] sm:$0xff]  ;;  %v152_v21 = vld [vmem:[%s344_s0 + $0xa8] sm:$0xff] }
   0xb   :  { %v150_v20 = vld [vmem:[%s344_s0 + $0x38] sm:$0xff]  ;;  %147 = vst [vmem:[%s345_s1 + $0x28] sm:$0xff] %v146_v18  ;;  %149 = vst [vmem:[%s345_s1 + $0x98] sm:$0xff] %v148_v19  ;;  %v154_v22 = vld [vmem:[%s344_s0 + $0x28] sm:$0xff] }
   0xc   :  { %151 = vst [vmem:[%s345_s1 + $0x38] sm:$0xff] %v150_v20  ;;  %v156_v23 = vld [vmem:[%s344_s0 + $0x98] sm:$0xff]  ;;  %153 = vst [vmem:[%s345_s1 + $0xa8] sm:$0xff] %v152_v21  ;;  %v160_v25 = vld [vmem:[%s344_s0 + $0x88] sm:$0xff] }
   0xd   :  { %155 = vst [vmem:[%s345_s1 + $0x48] sm:$0xff] %v154_v22  ;;  %157 = vst [vmem:[%s345_s1 + $0xb8] sm:$0xff] %v156_v23  ;;  %v158_v24 = vld [vmem:[%s344_s0 + $0x18] sm:$0xff]  ;;  %v162_v26 = vld [vmem:[%s344_s0 + $0x8] sm:$0xff] }
   0xe   :  { %159 = vst [vmem:[%s345_s1 + $0x58] sm:$0xff] %v158_v24  ;;  %161 = vst [vmem:[%s345_s1 + $0xc8] sm:$0xff] %v160_v25  ;;  %v164_v27 = vld [vmem:[%s344_s0 + $0x78] sm:$0xff] }
   0xf   :  { %163 = vst [vmem:[%s345_s1 + $0x68] sm:$0xff] %v162_v26  ;;  %165 = vst [vmem:[%s345_s1 + $0xd8] sm:$0xff] %v164_v27 }

// kernel: _lambda_.4
= control target key start
LH: loop header
LB: loop body
LE: loop exit
PB: predicated region body
PF: predicated region fallthrough
CT: control target
= control target key end

     0   :  { %s276_s6 = smov 0   ;;  %s278_s7 = smov 0   ;;  %s355_s0 = inlined_call_operand.vmem [shape: f32[16,512], index: 0, kind: input, shape index: {}]   ;;  %s356_s1 = inlined_call_operand.vmem [shape: f32[16,2], index: 1, kind: output, shape index: {}]  }
   0x1   :  { %s280_s8 = smov 0  }
   0x2 LB: > { %s204_s9 = sadd.s32 4294967295, %s263_s8   ;;  %s293_s10 = sadd.s32 1, %s263_s8   ;;  %s263_s8 = sphi %s280_s8, %s359_s8   ;;  %s259_s7 = sphi %s278_s7, %s358_s7   ;;  %s255_s6 = sphi %s276_s6, %s357_s6  }
   0x3   : > { %s15_s11 = ssub.s32 %s263_s8, %s293_s10  ;;  %s18_s12 = sadd.s32 1, %s259_s7 }
   0x4   : > { %p16_p0 = scmp.eq.s32.totalorder %s15_s11, 0  ;;  %p25_p1 = scmp.ne.s32.totalorder %s259_s7, %s255_s6 }
   0x5   : > { %p26_p2 = scmp.eq.s32.totalorder %s263_s8, 0  ;;  %p206_p4 = scmp.ge.s32.totalorder %s263_s8, 2 }
   0x6   : > { %s302_s13 = scalar_select %p16_p0, %s259_s7, %s18_s12  }
   0x7   : > { %p27_p3 = por %p26_p2, %p25_p1  ;;  %72 = sbr.rel (%p206_p4) target bundleno = 21 (0x15), region = 16 }
   0xe   : > { %75 = sbr.rel (!%p27_p3) target bundleno = 21 (0x15), region = 20  ;;  %s77_s14 = sand.u32 (%p27_p3), 1, %s259_s7  }
   0xf   : > { %s215_s15 = sshll.u32 (%p27_p3), %s263_s8, 4  ;;  %s207_s16 = sshll.u32 (%p27_p3), %s77_s14, 5 }
  0x10   : > { %s82_s19 = scalar_lea.vmem (%p27_p3), %s355_s0, %s215_s15  ;;  %s79_s20 = scalar_lea.vmem (%p27_p3), [#allocation2], %s207_s16 }
  0x11   : > { %v95_v0 = vld [vmem:[%s82_s19] sm:$0xff] (%p27_p3)  ;;  %v97_v1 = vld [vmem:[%s82_s19 + $0x8] sm:$0xff] (%p27_p3) }
  0x12   : > { %v99_v2 = vld [vmem:[%s82_s19 + $0x20] sm:$0xff] (%p27_p3)  ;;  %96 = vst [vmem:[%s79_s20] sm:$0xff] (%p27_p3), %v95_v0  ;;  %98 = vst [vmem:[%s79_s20 + $0x8] sm:$0xff] (%p27_p3), %v97_v1  ;;  %v101_v3 = vld [vmem:[%s82_s19 + $0x28] sm:$0xff] (%p27_p3) }
  0x13   : > { %100 = vst [vmem:[%s79_s20 + $0x10] sm:$0xff] (%p27_p3), %v99_v2  ;;  %102 = vst [vmem:[%s79_s20 + $0x18] sm:$0xff] (%p27_p3), %v101_v3 }
  0x15 PF: > { %p210_p5 = scmp.ge.s32.totalorder %s263_s8, 1  ;;  %p107_p6 = scmp.lt.s32.totalorder %s263_s8, 3 }
  0x17   : > { %p108_p7 = pnand %p210_p5, %p107_p6 }
  0x18   : > { %s114_s21 = sand.u32 (!%p108_p7), 1, %s255_s6   ;;  %p212_p8 = scmp.ne.s32.totalorder (!%p108_p7), %s204_s9, 0 }
  0x19   : > { %111 = sbr.rel (%p108_p7) target bundleno = 201 (0xc9), region = 43  ;;  %s211_s22 = sshll.u32 (!%p108_p7), %s114_s21, 5 }
  0x1a   : > { %s116_s23 = scalar_lea.vmem (!%p108_p7), [#allocation2], %s211_s22 }
  0x20   : > { %132 = sbr.rel (%p212_p8) target bundleno = 39 (0x27), region = 51  ;;  %vm133_vm0 = vcmask (!%p212_p8), 15360   ;;  %v265_v4 = vmov (!%p212_p8), 0.0  }
  0x21   : > { %134 = vst.msk [vmem:[%s356_s1] sm:$0xff] (!%p212_p8), %vm133_vm0, %v265_v4  ;;  %135 = vst.msk [vmem:[%s356_s1 + $0x8] sm:$0xff] (!%p212_p8), %vm133_vm0, %v265_v4 }
  0x27 PF: > { %v136_v5 = vld [vmem:[%s116_s23] sm:$0xff]  ;;  %v137_v6 = vld [vmem:[%s116_s23 + $0x8] sm:$0xff]  ;;  %v138_v7 = vld [vmem:[%s116_s23 + $0x10] sm:$0xff]  ;;  %vm150_vm1 = vcmask 7168   ;;  %vm167_vm2 = vcmask 15368  }
  0x28   : > { %v142_v8 = vadd.f32 %v137_v6, %v136_v5  ;;  %v139_v9 = vld [vmem:[%s116_s23 + $0x18] sm:$0xff]  ;;  %v155_v10 = vmul.f32 %v136_v5, %v136_v5  ;;  %v156_v11 = vmul.f32 %v137_v6, %v137_v6  ;;  %v157_v12 = vmul.f32 %v138_v7, %v138_v7  ;;  %v140_v17 = vld [vmem:[%s356_s1] sm:$0xff]  ;;  %v141_v20 = vld [vmem:[%s356_s1 + $0x8] sm:$0xff] }
  0x29   : > { %v158_v13 = vmul.f32 %v139_v9, %v139_v9  ;;  %v145_v14 = vadd.f32 %v139_v9, %v138_v7 }
  0x2a   : > { %143 = vadd.xlane.f32.xlu0 %v142_v8  ;;  %v159_v15 = vadd.f32 %v156_v11, %v155_v10 }
  0x2b   : > { %v162_v16 = vadd.f32 %v158_v13, %v157_v12 }
  0x2c   : > { %160 = vadd.xlane.f32.xlu1 %v159_v15 }
  0x2e   : > { %146 = vadd.xlane.f32.xlu0 %v145_v14 }
  0x30   : > { %163 = vadd.xlane.f32.xlu1 %v162_v16 }
  0xb7   : > { %v144_v18 = vpop.xlane.xlu0 %143 }
  0xb8   : > { %v148_v19 = vadd.f32 %v144_v18, %v140_v17 }
  0xb9   : > { %v161_v23 = vpop.xlane.xlu1 %160 }
  0xba   : > { %151 = vst.msk [vmem:[%s356_s1] sm:$0xff] %vm150_vm1, %v148_v19 }
  0xbb   : > { %v147_v21 = vpop.xlane.xlu0 %146 }
  0xbc   : > { %v149_v22 = vadd.f32 %v147_v21, %v141_v20 }
  0xbd   : > { %v164_v26 = vpop.xlane.xlu1 %163 }
  0xbe   : > { %152 = vst.msk [vmem:[%s356_s1 + $0x8] sm:$0xff] %vm150_vm1, %v149_v22 }
  0xc1   : > { %v153_v24 = vld [vmem:[%s356_s1] sm:$0xff] }
  0xc2   : > { %v165_v25 = vadd.f32 %v161_v23, %v153_v24 }
  0xc4   : > { %168 = vst.msk [vmem:[%s356_s1] sm:$0xff] %vm167_vm2, %v165_v25 }
  0xc5   : > { %v154_v27 = vld [vmem:[%s356_s1 + $0x8] sm:$0xff] }
  0xc6   : > { %v166_v28 = vadd.f32 %v164_v26, %v154_v27 }
  0xc8   : > { %169 = vst.msk [vmem:[%s356_s1 + $0x8] sm:$0xff] %vm167_vm2, %v166_v28 }
  0xc9 PF: > { %p8_p9 = scmp.ge.s32.totalorder %s293_s10, 4   ;;  %s357_s6 = smov %s259_s7 }
  0xca   : > { %s358_s7 = smov %s302_s13  ;;  %s359_s8 = smov %s293_s10 }
  0xcb   :  { %10 = sbr.rel (!%p8_p9) target bundleno = 2 (0x2), region = 82 }

// kernel: _lambda_.5
= control target key start
LH: loop header
LB: loop body
LE: loop exit
PB: predicated region body
PF: predicated region fallthrough
CT: control target
= control target key end

     0   :  { %s913_s21 = smov 0   ;;  %s915_s22 = smov 0   ;;  %s1092_s0 = inlined_call_operand.vmem [shape: f32[16,512], index: 0, kind: input, shape index: {}]   ;;  %s1093_s1 = inlined_call_operand.vmem [shape: f32[16,1], index: 1, kind: input, shape index: {}]   ;;  %s1094_s2 = inlined_call_operand.vmem [shape: f32[16,1], index: 2, kind: input, shape index: {}]   ;;  %s1095_s3 = inlined_call_operand.vmem [shape: f32[3,144], index: 3, kind: input, shape index: {}]   ;;  %s1096_s4 = inlined_call_operand.vmem [shape: f32[9,256], index: 4, kind: input, shape index: {}]   ;;  %s1097_s5 = inlined_call_operand.vmem [shape: f32[3,1], index: 5, kind: input, shape index: {}]   ;;  %s1098_s6 = inlined_call_operand.vmem [shape: f32[3,512], index: 6, kind: output, shape index: {}]  }
   0x1   :  { %s917_s23 = smov 0  }
   0x2 LB: > { %s743_s24 = sadd.s32 4294967295, %s867_s23   ;;  %s930_s25 = sadd.s32 1, %s867_s23   ;;  %s867_s23 = sphi %s917_s23, %s1101_s23   ;;  %s863_s22 = sphi %s915_s22, %s1100_s22   ;;  %s859_s21 = sphi %s913_s21, %s1099_s21  }
   0x3   : > { %s20_s26 = ssub.s32 %s867_s23, %s930_s25  ;;  %s23_s27 = sadd.s32 1, %s863_s22 }
   0x4   : > { %p21_p0 = scmp.eq.s32.totalorder %s20_s26, 0  ;;  %p30_p1 = scmp.ne.s32.totalorder %s863_s22, %s859_s21 }
   0x5   : > { %p31_p2 = scmp.eq.s32.totalorder %s867_s23, 0  ;;  %p746_p4 = scmp.ge.s32.totalorder %s867_s23, 2 }
   0x6   : > { %s939_s28 = scalar_select %p21_p0, %s863_s22, %s23_s27  }
   0x7   : > { %p32_p3 = por %p31_p2, %p30_p1  ;;  %202 = sbr.rel (%p746_p4) target bundleno = 21 (0x15), region = 36 }
   0xe   : > { %205 = sbr.rel (!%p32_p3) target bundleno = 21 (0x15), region = 40  ;;  %s207_s29 = sand.u32 (%p32_p3), 1, %s863_s22  }
   0xf   : > { %s764_s30 = sshll.u32 (%p32_p3), %s867_s23, 4  ;;  %s747_s7 = sshll.u32 (%p32_p3), %s207_s29, 5 }
  0x10   : > { %s212_s10 = scalar_lea.vmem (%p32_p3), %s1092_s0, %s764_s30  ;;  %s209_s11 = scalar_lea.vmem (%p32_p3), [#allocation2], %s747_s7 }
  0x11   : > { %v225_v0 = vld [vmem:[%s212_s10] sm:$0xff] (%p32_p3)  ;;  %v227_v1 = vld [vmem:[%s212_s10 + $0x8] sm:$0xff] (%p32_p3) }
  0x12   : > { %v229_v2 = vld [vmem:[%s212_s10 + $0x20] sm:$0xff] (%p32_p3)  ;;  %226 = vst [vmem:[%s209_s11] sm:$0xff] (%p32_p3), %v225_v0  ;;  %228 = vst [vmem:[%s209_s11 + $0x8] sm:$0xff] (%p32_p3), %v227_v1  ;;  %v231_v3 = vld [vmem:[%s212_s10 + $0x28] sm:$0xff] (%p32_p3) }
  0x13   : > { %230 = vst [vmem:[%s209_s11 + $0x10] sm:$0xff] (%p32_p3), %v229_v2  ;;  %232 = vst [vmem:[%s209_s11 + $0x18] sm:$0xff] (%p32_p3), %v231_v3 }
  0x15 PF: > { %p750_p5 = scmp.ge.s32.totalorder %s867_s23, 1  ;;  %p237_p6 = scmp.lt.s32.totalorder %s867_s23, 3 }
  0x17   : > { %p238_p7 = pnand %p750_p5, %p237_p6 }
  0x18   : > { %v300_v4 = vld [vmem:[%s1094_s2] sm:$0xff] (!%p238_p7)  ;;  %v869_v6 = vmov (!%p238_p7), 0   ;;  %v301_v7 = vld [vmem:[%s1094_s2 + $0x8] sm:$0xff] (!%p238_p7)  ;;  %s244_s20 = sand.u32 (!%p238_p7), 1, %s859_s21   ;;  %s870_s21 = smov (!%p238_p7), 17   ;;  %vm602_vm0 = vcmask (!%p238_p7), 130048   ;;  %v360_v2 = vlaneseq (!%p238_p7) }
  0x19   : > { %241 = sbr.rel (%p238_p7) target bundleno = 589 (0x24d), region = 63  ;;  %v284_v5 = vld [vmem:[%s1093_s1] sm:$0xff] (!%p238_p7)  ;;  %835 = vset.pattern.permute.xlu1 (!%p238_p7), %v869_v6  ;;  %834 = vset.pattern.permute.xlu0 (!%p238_p7), %v869_v6  ;;  %v285_v8 = vld [vmem:[%s1093_s1 + $0x8] sm:$0xff] (!%p238_p7)  ;;  %s751_s26 = sshll.u32 (!%p238_p7), %s244_s20, 5 }
  0x1a   : > { %304 = vperm.xlu1 (!%p238_p7), %835, %v300_v4   ;;  %288 = vperm.xlu0 (!%p238_p7), %834, %v284_v5   ;;  %s246_s27 = scalar_lea.vmem (!%p238_p7), [#allocation2], %s751_s26  ;;  %s871_s29 = smov (!%p238_p7), 16   ;;  %v1006_v63 = vld [vmem:[%s1095_s3] sm:$0x77] (!%p238_p7)  ;;  %v370_v3 = vshrl.u32 (!%p238_p7), %v360_v2, 7  ;;  %v1016_v5 = vand.u32 (!%p238_p7), 127, %v360_v2 }
  0x1b   : > { %v280_v9 = vld [vmem:[%s246_s27] sm:$0xff] (!%p238_p7)  ;;  %v281_v10 = vld [vmem:[%s246_s27 + $0x8] sm:$0xff] (!%p238_p7)  ;;  %v282_v17 = vld [vmem:[%s246_s27 + $0x10] sm:$0xff] (!%p238_p7)  ;;  %s872_s30 = smov (!%p238_p7), 15   ;;  %s873_s7 = smov (!%p238_p7), 1   ;;  %v601_v0 = vcombine.high (!%p238_p7), %v1006_v63, %v1006_v63 }
  0x1c   : > { %v283_v18 = vld [vmem:[%s246_s27 + $0x18] sm:$0xff] (!%p238_p7)  ;;  %s874_s8 = smov (!%p238_p7), 127   ;;  %s875_s9 = smov (!%p238_p7), 113   ;;  %v594_v1 = vld [vmem:[%s1097_s5] sm:$0x7] (!%p238_p7)  ;;  %v1018_v6 = vsub.s32 (!%p238_p7), 0, %v370_v3 }
  0x1d   : > { %s876_s10 = smov (!%p238_p7), 112   ;;  %s877_s11 = smov (!%p238_p7), 111   ;;  %761 = vmatprep.mubr.msk.f32.mxu0 (!%p238_p7), %vm602_vm0, %v601_v0  ;;  %vm362_vm1 = vcmp.lt.s32.totalorder (!%p238_p7), %v1016_v5, 17  ;;  %vm391_vm2 = vcmp.lt.s32.totalorder (!%p238_p7), %v1016_v5, 16  ;;  %vm421_vm3 = vcmp.lt.s32.totalorder (!%p238_p7), %v1016_v5, 15  ;;  %vm451_vm4 = vcmp.lt.s32.totalorder (!%p238_p7), %v1016_v5, 1 }
  0x1e   : > { %309 = vperm.xlu1 (!%p238_p7), %835, %v301_v7   ;;  %293 = vperm.xlu0 (!%p238_p7), %834, %v285_v8   ;;  %v1020_v7 = vsub.s32 (!%p238_p7), 1, %v370_v3  ;;  %v367_v8 = vld [vmem:[%s1096_s4] ss:$8 sm:$0x3] (!%p238_p7)  ;;  %vm481_vm5 = vcmp.lt.s32.totalorder (!%p238_p7), %v1016_v5, 127  ;;  %vm511_vm6 = vcmp.lt.s32.totalorder (!%p238_p7), %v1016_v5, 113 }
  0x1f   : > { %v756_v0 = vld [vmem:[%s1096_s4 + $0x3] ss:$8 sm:$0x3] (!%p238_p7)  ;;  %vm541_vm7 = vcmp.lt.s32.totalorder (!%p238_p7), %v1016_v5, 112  ;;  %vm571_vm8 = vcmp.lt.s32.totalorder (!%p238_p7), %v1016_v5, 111  ;;  %s752_s13 = sshll.u32 (!%p238_p7), %s743_s24, 1 }
  0x20   : > { %p275_p8 = scmp.lt.s32.totalorder %s752_s13, 3 }
  0x22   : > { %s1103_s13 = smov (!%p275_p8, %s752_s13), 3 }
  0x23   : > { %s753_s14 = sshll.u32 %s1103_s13, 2 }
  0x24   : > { %s278_s17 = scalar_lea.vmem %s1098_s6, %s753_s14 }
  0x99   : > { %v289_v11 = vpop.permute.xlu0 %288  ;;  %v305_v12 = vpop.permute.xlu1 %304 }
  0x9a   : > { %v296_v13 = vmul.f32 %v289_v11, %v280_v9  ;;  %v297_v14 = vmul.f32 %v289_v11, %v281_v10  ;;  %v372_v11 = vrot.slane %v367_v8, %v1018_v6 }
  0x9c   : > { %v312_v15 = vadd.f32 %v305_v12, %v296_v13  ;;  %v313_v16 = vadd.f32 %v305_v12, %v297_v14  ;;  %v376_v12 = vrot.slane %v367_v8, %v1020_v7  ;;  %v462_v8 = vrot.slane %v756_v0, %v1018_v6 }
  0x9d   : > { %v294_v19 = vpop.permute.xlu0 %293  ;;  %v310_v26 = vpop.permute.xlu1 %309 }
  0x9e   : > { %v320_v20 = vmul.f32 0.044715, %v312_v15  ;;  %v321_v21 = vmul.f32 0.044715, %v313_v16  ;;  %v298_v22 = vmul.f32 %v294_v19, %v282_v17  ;;  %v299_v23 = vmul.f32 %v294_v19, %v283_v18 }
  0x9f   : > { %v316_v47 = vmul.f32 0.5, %v312_v15  ;;  %v317_v52 = vmul.f32 0.5, %v313_v16 }
  0xa0   : > { %v324_v24 = vmul.f32 %v320_v20, %v312_v15  ;;  %v325_v25 = vmul.f32 %v321_v21, %v313_v16  ;;  %v314_v27 = vadd.f32 %v310_v26, %v298_v22  ;;  %v315_v28 = vadd.f32 %v310_v26, %v299_v23  ;;  %v754_v23 = vld [vmem:[%s1096_s4 + $0x1] ss:$8 sm:$0x3] }
  0xa2   : > { %v328_v29 = vmul.f32 %v324_v24, %v312_v15  ;;  %v329_v30 = vmul.f32 %v325_v25, %v313_v16  ;;  %v322_v31 = vmul.f32 0.044715, %v314_v27  ;;  %v323_v32 = vmul.f32 0.044715, %v315_v28 }
  0xa3   : > { %v318_v54 = vmul.f32 0.5, %v314_v27  ;;  %v319_v57 = vmul.f32 0.5, %v315_v28 }
  0xa4   : > { %v332_v33 = vadd.f32 %v328_v29, %v312_v15  ;;  %v333_v34 = vadd.f32 %v329_v30, %v313_v16  ;;  %v326_v35 = vmul.f32 %v322_v31, %v314_v27  ;;  %v327_v36 = vmul.f32 %v323_v32, %v315_v28 }
  0xa5   : > { %v406_v29 = vrot.slane %v754_v23, %v1020_v7 }
  0xa6   : > { %v336_v37 = vmul.f32 0.7978846, %v332_v33  ;;  %v337_v38 = vmul.f32 0.7978846, %v333_v34  ;;  %v330_v39 = vmul.f32 %v326_v35, %v314_v27  ;;  %v331_v40 = vmul.f32 %v327_v36, %v315_v28 }
  0xa8   : > { %837 = vtanh.f32 %v336_v37  ;;  %v334_v41 = vadd.f32 %v330_v39, %v314_v27  ;;  %v335_v42 = vadd.f32 %v331_v40, %v315_v28  ;;  %v402_v28 = vrot.slane %v754_v23, %v1018_v6  ;;  %v755_v40 = vld [vmem:[%s1096_s4 + $0x2] ss:$8 sm:$0x3] }
  0xa9   : > { %839 = vtanh.f32 %v337_v38 }
  0xaa   : > { %v338_v43 = vmul.f32 0.7978846, %v334_v41  ;;  %v339_v44 = vmul.f32 0.7978846, %v335_v42 }
  0xac   : > { %841 = vtanh.f32 %v338_v43 }
  0xad   : > { %843 = vtanh.f32 %v339_v44 }
  0xb2   : > { %v838_v45 = vpop.eup %837 }
  0xb3   : > { %v840_v46 = vpop.eup %839  ;;  %v344_v48 = vadd.f32 1.0, %v838_v45  ;;  %v432_v45 = vrot.slane %v755_v40, %v1018_v6 }
  0xb4   : > { %v345_v49 = vadd.f32 1.0, %v840_v46  ;;  %v436_v46 = vrot.slane %v755_v40, %v1020_v7 }
  0xb5   : > { %v962_v50 = vmul.f32 %v344_v48, %v316_v47 }
  0xb6   : > { %v842_v51 = vpop.eup %841  ;;  %v965_v56 = vmul.f32 %v345_v49, %v317_v52 }
  0xb7   : > { %352 = vrot.lane.b32.xlu0 %v962_v50, %s870_s21  ;;  %v844_v53 = vpop.eup %843  ;;  %v346_v55 = vadd.f32 1.0, %v842_v51 }
  0xb8   : > { %v347_v58 = vadd.f32 1.0, %v844_v53 }
  0xb9   : > { %v967_v59 = vmul.f32 %v346_v55, %v318_v54 }
  0xba   : > { %v969_v60 = vmul.f32 %v347_v58, %v319_v57 }
  0xbb   : > { %356 = vrot.lane.b32.xlu0 %v965_v56, %s870_s21  ;;  %354 = vrot.lane.b32.xlu1 %v967_v59, %s870_s21  ;;  %v783_v61 = vpack.c.bf16 %v967_v59, %v962_v50 }
  0xbc   : > { %v781_v62 = vpack.c.bf16 %v969_v60, %v965_v56 }
  0xbf   : > { %383 = vrot.lane.b32.xlu0 %v962_v50, %s871_s29  ;;  %358 = vrot.lane.b32.xlu1 %v969_v60, %s870_s21 }
  0xc3   : > { %387 = vrot.lane.b32.xlu0 %v965_v56, %s871_s29  ;;  %385 = vrot.lane.b32.xlu1 %v967_v59, %s871_s29 }
  0xc7   : > { %413 = vrot.lane.b32.xlu0 %v962_v50, %s872_s30  ;;  %389 = vrot.lane.b32.xlu1 %v969_v60, %s871_s29 }
  0xcb   : > { %417 = vrot.lane.b32.xlu0 %v965_v56, %s872_s30  ;;  %415 = vrot.lane.b32.xlu1 %v967_v59, %s872_s30 }
  0xcf   : > { %443 = vrot.lane.b32.xlu0 %v962_v50, %s873_s7  ;;  %419 = vrot.lane.b32.xlu1 %v969_v60, %s872_s30 }
  0xd3   : > { %447 = vrot.lane.b32.xlu0 %v965_v56, %s873_s7  ;;  %445 = vrot.lane.b32.xlu1 %v967_v59, %s873_s7 }
  0xd7   : > { %473 = vrot.lane.b32.xlu0 %v962_v50, %s874_s8  ;;  %449 = vrot.lane.b32.xlu1 %v969_v60, %s873_s7 }
  0xdb   : > { %477 = vrot.lane.b32.xlu0 %v965_v56, %s874_s8  ;;  %475 = vrot.lane.b32.xlu1 %v967_v59, %s874_s8 }
  0xdf   : > { %503 = vrot.lane.b32.xlu0 %v962_v50, %s875_s9  ;;  %479 = vrot.lane.b32.xlu1 %v969_v60, %s874_s8 }
  0xe3   : > { %507 = vrot.lane.b32.xlu0 %v965_v56, %s875_s9  ;;  %505 = vrot.lane.b32.xlu1 %v967_v59, %s875_s9 }
  0xe7   : > { %533 = vrot.lane.b32.xlu0 %v962_v50, %s876_s10  ;;  %509 = vrot.lane.b32.xlu1 %v969_v60, %s875_s9 }
  0xeb   : > { %537 = vrot.lane.b32.xlu0 %v965_v56, %s876_s10  ;;  %535 = vrot.lane.b32.xlu1 %v967_v59, %s876_s10 }
  0xef   : > { %563 = vrot.lane.b32.xlu0 %v962_v50, %s877_s11  ;;  %539 = vrot.lane.b32.xlu1 %v969_v60, %s876_s10 }
  0xf3   : > { %567 = vrot.lane.b32.xlu0 %v965_v56, %s877_s11  ;;  %565 = vrot.lane.b32.xlu1 %v967_v59, %s877_s11 }
  0xf7   : > { %597 = vperm.xlu0 %834, %v594_v1   ;;  %569 = vrot.lane.b32.xlu1 %v969_v60, %s877_s11 }
 0x129   : > { %v353_v4 = vpop.permute.xlu0 %352 }
 0x12d   : > { %v357_v9 = vpop.permute.xlu0 %356  ;;  %v355_v10 = vpop.permute.xlu1 %354 }
 0x12e   : > { %v363_v13 = vsel %vm362_vm1, %v353_v4, %v357_v9  ;;  %v365_v14 = vsel %vm362_vm1, %v357_v9, %v353_v4  ;;  %v466_v9 = vrot.slane %v756_v0, %v1020_v7 }
 0x12f   : > { %v379_v19 = vmul.f32 %v372_v11, %v365_v14  ;;  %v380_v21 = vmul.f32 %v376_v12, %v363_v13 }
 0x131   : > { %v384_v15 = vpop.permute.xlu0 %383  ;;  %v359_v16 = vpop.permute.xlu1 %358 }
 0x132   : > { %v364_v17 = vsel %vm362_vm1, %v355_v10, %v359_v16  ;;  %v366_v18 = vsel %vm362_vm1, %v359_v16, %v355_v10 }
 0x133   : > { %v381_v20 = vmul.f32 %v372_v11, %v366_v18  ;;  %v382_v22 = vmul.f32 %v376_v12, %v364_v17 }
 0x135   : > { %v388_v24 = vpop.permute.xlu0 %387  ;;  %v386_v25 = vpop.permute.xlu1 %385  ;;  %v765_v26 = vpack.c.bf16 %v382_v22, %v380_v21  ;;  %v767_v27 = vpack.c.bf16 %v381_v20, %v379_v19  ;;  %v757_v20 = vld [vmem:[%s1096_s4 + $0x5] ss:$8 sm:$0x3] }
 0x136   : > { %v392_v30 = vsel %vm391_vm2, %v384_v15, %v388_v24  ;;  %v394_v31 = vsel %vm391_vm2, %v388_v24, %v384_v15 }
 0x137   : > { %766 = vmatprep.subr.bf16.mxu0 %v765_v26  ;;  %v409_v36 = vmul.f32 %v402_v28, %v394_v31  ;;  %v410_v37 = vmul.f32 %v406_v29, %v392_v30  ;;  %v496_v26 = vrot.slane %v757_v20, %v1020_v7 }
 0x138   : > { %768 = vmatpush1.bf16.msra.mxu0 %v767_v27 }
 0x139   : > { %v414_v32 = vpop.permute.xlu0 %413  ;;  %v390_v33 = vpop.permute.xlu1 %389 }
 0x13a   : > { %v393_v34 = vsel %vm391_vm2, %v386_v25, %v390_v33  ;;  %v395_v35 = vsel %vm391_vm2, %v390_v33, %v386_v25  ;;  %v492_v25 = vrot.slane %v757_v20, %v1018_v6 }
 0x13b   : > { %v411_v38 = vmul.f32 %v402_v28, %v395_v35  ;;  %v412_v39 = vmul.f32 %v406_v29, %v393_v34 }
 0x13d   : > { %v418_v41 = vpop.permute.xlu0 %417  ;;  %v416_v42 = vpop.permute.xlu1 %415  ;;  %v769_v43 = vpack.c.bf16 %v412_v39, %v410_v37  ;;  %v771_v44 = vpack.c.bf16 %v411_v38, %v409_v36  ;;  %v758_v37 = vld [vmem:[%s1096_s4 + $0x6] ss:$8 sm:$0x3] }
 0x13e   : > { %v422_v47 = vsel %vm421_vm3, %v414_v32, %v418_v41  ;;  %v424_v48 = vsel %vm421_vm3, %v418_v41, %v414_v32  ;;  %v526_v40 = vrot.slane %v758_v37, %v1020_v7 }
 0x13f   : > { %770 = vmatprep.subr.bf16.mxu0 %v769_v43  ;;  %v439_v54 = vmul.f32 %v432_v45, %v424_v48  ;;  %v440_v55 = vmul.f32 %v436_v46, %v422_v47  ;;  %v759_v48 = vld [vmem:[%s1096_s4 + $0x7] ss:$8 sm:$0x3] }
 0x140   : > { %772 = vmatpush1.bf16.msra.mxu0 %v771_v44 }
 0x141   : > { %v444_v49 = vpop.permute.xlu0 %443  ;;  %v420_v51 = vpop.permute.xlu1 %419 }
 0x142   : > { %v423_v52 = vsel %vm421_vm3, %v416_v42, %v420_v51  ;;  %v425_v53 = vsel %vm421_vm3, %v420_v51, %v416_v42 }
 0x143   : > { %v441_v57 = vmul.f32 %v432_v45, %v425_v53  ;;  %v442_v58 = vmul.f32 %v436_v46, %v423_v52 }
 0x145   : > { %v448_v1 = vpop.permute.xlu0 %447  ;;  %v446_v2 = vpop.permute.xlu1 %445  ;;  %v773_v3 = vpack.c.bf16 %v442_v58, %v440_v55  ;;  %v775_v4 = vpack.c.bf16 %v441_v57, %v439_v54  ;;  %v552_v54 = vrot.slane %v759_v48, %v1018_v6  ;;  %v556_v55 = vrot.slane %v759_v48, %v1020_v7 }
 0x146   : > { %v452_v10 = vsel %vm451_vm4, %v444_v49, %v448_v1  ;;  %v454_v11 = vsel %vm451_vm4, %v448_v1, %v444_v49 }
 0x147   : > { %774 = vmatprep.subr.bf16.mxu0 %v773_v3  ;;  %v469_v16 = vmul.f32 %v462_v8, %v454_v11  ;;  %v470_v17 = vmul.f32 %v466_v9, %v452_v10  ;;  %v760_v11 = vld [vmem:[%s1096_s4 + $0x10] ss:$8 sm:$0x3] }
 0x148   : > { %776 = vmatpush1.bf16.msra.mxu0 %v775_v4 }
 0x149   : > { %v474_v12 = vpop.permute.xlu0 %473  ;;  %v450_v13 = vpop.permute.xlu1 %449 }
 0x14a   : > { %v453_v14 = vsel %vm451_vm4, %v446_v2, %v450_v13  ;;  %v455_v15 = vsel %vm451_vm4, %v450_v13, %v446_v2 }
 0x14b   : > { %v471_v18 = vmul.f32 %v462_v8, %v455_v15  ;;  %v472_v19 = vmul.f32 %v466_v9, %v453_v14 }
 0x14d   : > { %v478_v21 = vpop.permute.xlu0 %477  ;;  %v476_v22 = vpop.permute.xlu1 %475  ;;  %v777_v23 = vpack.c.bf16 %v472_v19, %v470_v17  ;;  %v779_v24 = vpack.c.bf16 %v471_v18, %v469_v16  ;;  %v582_v16 = vrot.slane %v760_v11, %v1018_v6  ;;  %v586_v17 = vrot.slane %v760_v11, %v1020_v7 }
 0x14e   : > { %v482_v27 = vsel %vm481_vm5, %v474_v12, %v478_v21  ;;  %v484_v28 = vsel %vm481_vm5, %v478_v21, %v474_v12 }
 0x14f   : > { %778 = vmatprep.subr.bf16.mxu0 %v777_v23  ;;  %v499_v33 = vmul.f32 %v492_v25, %v482_v27  ;;  %v500_v34 = vmul.f32 %v496_v26, %v484_v28 }
 0x150   : > { %780 = vmatpush1.bf16.msra.mxu0 %v779_v24 }
 0x151   : > { %v504_v29 = vpop.permute.xlu0 %503  ;;  %v480_v30 = vpop.permute.xlu1 %479  ;;  %782 = vmatprep.subr.bf16.mxu0 %v781_v62  ;;  %v522_v62 = vrot.slane %v758_v37, %v1018_v6 }
 0x152   : > { %v483_v31 = vsel %vm481_vm5, %v476_v22, %v480_v30  ;;  %v485_v32 = vsel %vm481_vm5, %v480_v30, %v476_v22 }
 0x153   : > { %v501_v35 = vmul.f32 %v492_v25, %v483_v31  ;;  %v502_v36 = vmul.f32 %v496_v26, %v485_v32 }
 0x154   : > { %784 = vmatpush1.bf16.msra.mxu0 %v783_v61 }
 0x155   : > { %v508_v38 = vpop.permute.xlu0 %507  ;;  %v506_v39 = vpop.permute.xlu1 %505  ;;  %v785_v56 = vpack.c.bf16 %v502_v36, %v500_v34  ;;  %v787_v60 = vpack.c.bf16 %v501_v35, %v499_v33 }
 0x156   : > { %v512_v41 = vsel %vm511_vm6, %v504_v29, %v508_v38  ;;  %v514_v42 = vsel %vm511_vm6, %v508_v38, %v504_v29 }
 0x157   : > { %786 = vmatprep.subr.bf16.mxu0 %v785_v56  ;;  %v529_v44 = vmul.f32 %v522_v62, %v512_v41  ;;  %v530_v45 = vmul.f32 %v526_v40, %v514_v42 }
 0x158   : > { %788 = vmatpush1.bf16.msra.mxu0 %v787_v60 }
 0x159   : > { %v534_v50 = vpop.permute.xlu0 %533  ;;  %v510_v59 = vpop.permute.xlu1 %509 }
 0x15a   : > { %v513_v61 = vsel %vm511_vm6, %v506_v39, %v510_v59  ;;  %v515_v43 = vsel %vm511_vm6, %v510_v59, %v506_v39 }
 0x15b   : > { %v531_v46 = vmul.f32 %v522_v62, %v513_v61  ;;  %v532_v47 = vmul.f32 %v526_v40, %v515_v43 }
 0x15d   : > { %v538_v49 = vpop.permute.xlu0 %537  ;;  %v536_v51 = vpop.permute.xlu1 %535  ;;  %v789_v52 = vpack.c.bf16 %v532_v47, %v530_v45  ;;  %v791_v53 = vpack.c.bf16 %v531_v46, %v529_v44 }
 0x15e   : > { %v542_v57 = vsel %vm541_vm7, %v534_v50, %v538_v49  ;;  %v544_v58 = vsel %vm541_vm7, %v538_v49, %v534_v50 }
 0x15f   : > { %790 = vmatprep.subr.bf16.mxu0 %v789_v52  ;;  %v559_v4 = vmul.f32 %v552_v54, %v542_v57  ;;  %v560_v8 = vmul.f32 %v556_v55, %v544_v58 }
 0x160   : > { %792 = vmatpush1.bf16.msra.mxu0 %v791_v53 }
 0x161   : > { %v564_v0 = vpop.permute.xlu0 %563  ;;  %v540_v1 = vpop.permute.xlu1 %539 }
 0x162   : > { %v543_v2 = vsel %vm541_vm7, %v536_v51, %v540_v1  ;;  %v545_v3 = vsel %vm541_vm7, %v540_v1, %v536_v51 }
 0x163   : > { %v561_v9 = vmul.f32 %v552_v54, %v543_v2  ;;  %v562_v10 = vmul.f32 %v556_v55, %v545_v3 }
 0x165   : > { %v566_v12 = vpop.permute.xlu1 %565  ;;  %v568_v13 = vpop.permute.xlu0 %567  ;;  %v793_v14 = vpack.c.bf16 %v562_v10, %v560_v8  ;;  %v795_v15 = vpack.c.bf16 %v561_v9, %v559_v4 }
 0x166   : > { %v572_v18 = vsel %vm571_vm8, %v564_v0, %v568_v13  ;;  %v574_v19 = vsel %vm571_vm8, %v568_v13, %v564_v0 }
 0x167   : > { %794 = vmatprep.subr.bf16.mxu0 %v793_v14  ;;  %v589_v23 = vmul.f32 %v582_v16, %v572_v18  ;;  %v590_v24 = vmul.f32 %v586_v17, %v574_v19 }
 0x168   : > { %796 = vmatpush1.bf16.msra.mxu0 %v795_v15 }
 0x169   : > { %v570_v20 = vpop.permute.xlu1 %569 }
 0x16a   : > { %v573_v21 = vsel %vm571_vm8, %v566_v12, %v570_v20  ;;  %v575_v22 = vsel %vm571_vm8, %v570_v20, %v566_v12 }
 0x16b   : > { %v591_v25 = vmul.f32 %v582_v16, %v573_v21  ;;  %v592_v26 = vmul.f32 %v586_v17, %v575_v22 }
 0x16d   : > { %v797_v5 = vpack.c.bf16 %v592_v26, %v590_v24  ;;  %v799_v27 = vpack.c.bf16 %v591_v25, %v589_v23 }
 0x16f   : > { %798 = vmatprep.subr.bf16.mxu0 %v797_v5 }
 0x170   : > { %800 = vmatpush1.bf16.msra.mxu0 %v799_v27 }
 0x173   : > { %670 = vmatmul.mubr.f32.vlgmr.msra.gmra.mrb[0].mxu0 %v1006_v63 }
 0x176   : > { %v598_v6 = vpop.permute.xlu0 %597 }
 0x246   : > { %v671_v7 = vpop.f32.mrb[0].mxu0 }
 0x247   : > { %v672_v28 = vadd.f32 %v671_v7, %v598_v6  ;;  %v673_v29 = vpop.f32.mrb[1].mxu0 }
 0x248   : > { %v674_v30 = vadd.f32 %v673_v29, %v598_v6 }
 0x24a   : > { %v678_v31 = vcombine.low %v672_v28, %v674_v30 }
 0x24c   : > { %680 = vst [vmem:[%s278_s17] sm:$0x77] %v678_v31 }
 0x24d PF: > { %p13_p9 = scmp.ge.s32.totalorder %s930_s25, 4   ;;  %s1099_s21 = smov %s863_s22 }
 0x24e   : > { %s1100_s22 = smov %s939_s28  ;;  %s1101_s23 = smov %s930_s25 }
 0x24f   :  { %15 = sbr.rel (!%p13_p9) target bundleno = 2 (0x2), region = 109 }

</bundles_post_ra>
